<compile_context>
chip_gen: v7x
topology: tpu7x:2x2x1
jax: 0.10.0
libtpu: 0.0.40
codegen_flags: <defaults>
</compile_context>

<pallas_src>
import functools

import jax
import jax.numpy as jnp
from jax import lax
from jax.experimental import pallas as pl
from jax.experimental.pallas import tpu as pltpu


# ----------------------------------------------------------------------------
# Tiling configuration
# ----------------------------------------------------------------------------
TARGET_TILE_M = 1024                 # >=512 rows ~ HBM roofline; fits 64 MiB VMEM (v7x)
VMEM_LIMIT_BYTES = 48 * 1024 * 1024  # above 32 MiB default, below v7x 64 MiB physical
BN_EPS = 1e-3


def _round_up(x, m):
    return ((x + m - 1) // m) * m


def _choose_tile(m):
    # multiple of 8 sublanes, capped at TARGET_TILE_M
    return min(TARGET_TILE_M, _round_up(m, 8))


def _pad_rows(x2d, m_pad):
    m = x2d.shape[0]
    if m_pad == m:
        return x2d
    return jnp.pad(x2d, ((0, m_pad - m), (0, 0)))


# ----------------------------------------------------------------------------
# Pallas kernels
# ----------------------------------------------------------------------------
def _stage_nddr_kernel(xp_ref, yp_ref, w1s_ref, w2s_ref, wa_ref, wb_ref,
                       z_ref, stats_ref):
    """Fused: stage 1x1 conv + ReLU for both tasks, then the two NDDR 1x1 convs
    as one lane-dense matmul pair (output Cout = 2C), plus accumulation of the
    per-channel sum / sum-of-squares needed for training-mode BatchNorm.

    Grid axis 0 tiles M and must be 'arbitrary' (stats_ref is revisited)."""
    @pl.when(pl.program_id(0) == 0)
    def _init():
        stats_ref[...] = jnp.zeros_like(stats_ref)

    f1 = jnp.maximum(
        jnp.dot(xp_ref[...], w1s_ref[...], preferred_element_type=jnp.float32), 0.0)
    f2 = jnp.maximum(
        jnp.dot(yp_ref[...], w2s_ref[...], preferred_element_type=jnp.float32), 0.0)

    # z[:, :C] = conv1(cat(f1,f2)),  z[:, C:] = conv2(cat(f1,f2))
    z = (jnp.dot(f1, wa_ref[...], preferred_element_type=jnp.float32)
         + jnp.dot(f2, wb_ref[...], preferred_element_type=jnp.float32))
    z_ref[...] = z

    ssum = jnp.sum(z, axis=0, keepdims=True)
    ssq = jnp.sum(z * z, axis=0, keepdims=True)
    stats_ref[...] += jnp.concatenate([ssum, ssq], axis=0)


def _bn_relu_kernel(z_ref, scale_ref, shift_ref, o_ref):
    # single FMA + ReLU per element; scale/shift precomputed per channel
    o_ref[...] = jnp.maximum(z_ref[...] * scale_ref[...] + shift_ref[...], 0.0)


def _heads_kernel(x_ref, y_ref, wx_ref, wy_ref,
                  xl_ref, yl_ref, xs_ref, ys_ref):
    # both task heads: 1x1 conv + channel softmax, fused in one call
    def head(v, w, l_ref, s_ref):
        logits = jnp.dot(v, w, preferred_element_type=jnp.float32)
        l_ref[...] = logits
        m = jnp.max(logits, axis=-1, keepdims=True)
        e = jnp.exp(logits - m)
        s_ref[...] = e / jnp.sum(e, axis=-1, keepdims=True)

    head(x_ref[...], wx_ref[...], xl_ref, xs_ref)
    head(y_ref[...], wy_ref[...], yl_ref, ys_ref)


# ----------------------------------------------------------------------------
# Pallas wrappers (tiled over M)
# ----------------------------------------------------------------------------
def _act_spec(tile_m, c):
    return pl.BlockSpec((tile_m, c), lambda i: (i, 0))


def _const_spec(shape):
    return pl.BlockSpec(shape, lambda i: (0, 0))


def pallas_stage_nddr(xp2, yp2, w1s, w2s, wa, wb, tile_m):
    m_pad, cin = xp2.shape
    c2 = wa.shape[1]
    grid = (pl.cdiv(m_pad, tile_m),)
    return pl.pallas_call(
        _stage_nddr_kernel,
        grid=grid,
        in_specs=[_act_spec(tile_m, cin), _act_spec(tile_m, cin),
                  _const_spec(w1s.shape), _const_spec(w2s.shape),
                  _const_spec(wa.shape), _const_spec(wb.shape)],
        out_specs=(pl.BlockSpec((tile_m, c2), lambda i: (i, 0)),
                   pl.BlockSpec((2, c2), lambda i: (0, 0))),
        out_shape=(jax.ShapeDtypeStruct((m_pad, c2), jnp.float32),
                   jax.ShapeDtypeStruct((2, c2), jnp.float32)),
        compiler_params=pltpu.CompilerParams(
            dimension_semantics=("arbitrary",),      # stats accumulation across tiles
            vmem_limit_bytes=VMEM_LIMIT_BYTES),
    )(xp2, yp2, w1s, w2s, wa, wb)


def pallas_bn_relu(z, scale, shift, tile_m):
    m_pad, c2 = z.shape
    grid = (pl.cdiv(m_pad, tile_m),)
    return pl.pallas_call(
        _bn_relu_kernel,
        grid=grid,
        in_specs=[_act_spec(tile_m, c2),
                  _const_spec((1, c2)), _const_spec((1, c2))],
        out_specs=pl.BlockSpec((tile_m, c2), lambda i: (i, 0)),
        out_shape=jax.ShapeDtypeStruct((m_pad, c2), jnp.float32),
        compiler_params=pltpu.CompilerParams(
            dimension_semantics=("parallel",),       # megacore-friendly on v7x
            vmem_limit_bytes=VMEM_LIMIT_BYTES),
    )(z, scale, shift)


def pallas_heads(x2, y2, wx, wy, tile_m):
    m_pad, c = x2.shape
    k = wx.shape[1]
    grid = (pl.cdiv(m_pad, tile_m),)
    out_spec = pl.BlockSpec((tile_m, k), lambda i: (i, 0))
    out_shape = jax.ShapeDtypeStruct((m_pad, k), jnp.float32)
    return pl.pallas_call(
        _heads_kernel,
        grid=grid,
        in_specs=[_act_spec(tile_m, c), _act_spec(tile_m, c),
                  _const_spec(wx.shape), _const_spec(wy.shape)],
        out_specs=(out_spec, out_spec, out_spec, out_spec),
        out_shape=(out_shape, out_shape, out_shape, out_shape),
        compiler_params=pltpu.CompilerParams(
            dimension_semantics=("parallel",),
            vmem_limit_bytes=VMEM_LIMIT_BYTES),
    )(x2, y2, wx, wy)


# ----------------------------------------------------------------------------
# Plain-JAX glue (layout, pooling, bilinear resize)
# ----------------------------------------------------------------------------
def avg_pool_2x2_nhwc(x):
    n, h, w, c = x.shape
    return x.reshape(n, h // 2, 2, w // 2, 2, c).mean(axis=(2, 4))


def bilinear_resize_nhwc(x, out_h, out_w):
    # F.interpolate(mode='bilinear', align_corners=True)
    n, h, w, c = x.shape
    ys = (jnp.arange(out_h, dtype=jnp.float32) * (h - 1) / (out_h - 1)
          if out_h > 1 else jnp.zeros((out_h,), jnp.float32))
    xs = (jnp.arange(out_w, dtype=jnp.float32) * (w - 1) / (out_w - 1)
          if out_w > 1 else jnp.zeros((out_w,), jnp.float32))
    y0 = jnp.floor(ys).astype(jnp.int32)
    x0 = jnp.floor(xs).astype(jnp.int32)
    y1 = jnp.minimum(y0 + 1, h - 1)
    x1 = jnp.minimum(x0 + 1, w - 1)
    wy = (ys - y0.astype(jnp.float32))[None, :, None, None]
    wx = (xs - x0.astype(jnp.float32))[None, None, :, None]
    rows = jnp.take(x, y0, axis=1) * (1.0 - wy) + jnp.take(x, y1, axis=1) * wy
    out = jnp.take(rows, x0, axis=2) * (1.0 - wx) + jnp.take(rows, x1, axis=2) * wx
    return out


# ----------------------------------------------------------------------------
# Parameter construction (deterministic, per the PyTorch __init__ semantics)
# ----------------------------------------------------------------------------
def make_params(in_channels, stage_channels, num_classes, init_weights=(0.9, 0.1)):
    key = jax.random.PRNGKey(0)
    params = {"net1_stages": [], "net2_stages": [], "nddr": []}
    cin = in_channels
    a, b = init_weights
    for cout in stage_channels:
        key, k1, k2 = jax.random.split(key, 3)
        # synthetic-backbone stage 1x1-conv weights, stored transposed (Cin, Cout)
        params["net1_stages"].append(
            0.1 * jax.random.normal(k1, (cin, cout), jnp.float32))
        params["net2_stages"].append(
            0.1 * jax.random.normal(k2, (cin, cout), jnp.float32))
        # NDDR 'constant' init: conv1 = [I*a | I*b], conv2 = [I*b | I*a].
        # Fused lane-dense form:  z = f1 @ Wa + f2 @ Wb,  Wa/Wb of shape (C, 2C),
        # z[:, :C] = conv1 output, z[:, C:] = conv2 output.
        eye = jnp.eye(cout, dtype=jnp.float32)
        wa = jnp.concatenate([(eye * a).T, (eye * b).T], axis=1)
        wb = jnp.concatenate([(eye * b).T, (eye * a).T], axis=1)
        params["nddr"].append({
            "wa": wa, "wb": wb,
            "gamma": jnp.ones((1, 2 * cout), jnp.float32),   # [bn1 gamma | bn2 gamma]
            "beta": jnp.zeros((1, 2 * cout), jnp.float32),   # [bn1 beta  | bn2 beta ]
        })
        cin = cout
    key, k1, k2 = jax.random.split(key, 3)
    params["net1_head"] = 0.1 * jax.random.normal(k1, (cin, num_classes), jnp.float32)
    params["net2_head"] = 0.1 * jax.random.normal(k2, (cin, num_classes), jnp.float32)
    return params


# ----------------------------------------------------------------------------
# NDDRNet forward (dataset='nyu_v2', shortcut=False, bn_before_relu=True)
# ----------------------------------------------------------------------------
def stage_nddr_forward(x_nhwc, y_nhwc, w1s, w2s, ndp):
    # synthetic backbone glue: 2x2 average pool (spatial reshuffle, plain JAX)
    xp = avg_pool_2x2_nhwc(x_nhwc)
    yp = avg_pool_2x2_nhwc(y_nhwc)
    n, h, w, cin = xp.shape
    m = n * h * w
    cout = w1s.shape[1]

    tile_m = _choose_tile(m)
    m_pad = _round_up(m, tile_m)
    xp2 = _pad_rows(xp.reshape(m, cin), m_pad)   # zero padding: contributes 0 to BN sums
    yp2 = _pad_rows(yp.reshape(m, cin), m_pad)

    # Pass 1: fused stage conv+ReLU -> NDDR convs (lane-dense 2C) + BN sum/sumsq
    z, stats = pallas_stage_nddr(xp2, yp2, w1s, w2s, ndp["wa"], ndp["wb"], tile_m)

    # Exact training-mode batch statistics over the true M pixels (biased var).
    # NOTE: E[x^2]-E[x]^2 form; clamped at 0 to guard against cancellation.
    inv_m = jnp.float32(1.0 / m)
    mean = stats[0:1] * inv_m                          # (1, 2C)
    var = jnp.maximum(stats[1:2] * inv_m - mean * mean, 0.0)
    scale = ndp["gamma"] * lax.rsqrt(var + BN_EPS)
    shift = ndp["beta"] - mean * scale

    # Pass 2: normalize (single FMA) + ReLU
    out = pallas_bn_relu(z, scale, shift, tile_m)[:m]  # (M, 2C)
    o1 = out[:, :cout].reshape(n, h, w, cout)
    o2 = out[:, cout:].reshape(n, h, w, cout)
    return o1, o2


def heads_forward(x_nhwc, y_nhwc, wx, wy):
    n, h, w, c = x_nhwc.shape
    m = n * h * w
    k = wx.shape[1]
    tile_m = _choose_tile(m)
    m_pad = _round_up(m, tile_m)
    x2 = _pad_rows(x_nhwc.reshape(m, c), m_pad)
    y2 = _pad_rows(y_nhwc.reshape(m, c), m_pad)
    xl, yl, xs, ys = pallas_heads(x2, y2, wx, wy, tile_m)
    rs = lambda t: t[:m].reshape(n, h, w, k)
    return rs(xl), rs(yl), rs(xs), rs(ys)


def nddrnet_forward(x_nchw, params):
    N, C, H, W = x_nchw.shape
    x = jnp.transpose(x_nchw, (0, 2, 3, 1)).astype(jnp.float32)  # NHWC
    y = x                                                        # y = x.clone()

    num_stages = len(params["net1_stages"])
    for s in range(num_stages):
        x, y = stage_nddr_forward(x, y,
                                  params["net1_stages"][s],
                                  params["net2_stages"][s],
                                  params["nddr"][s])
    # TODO(synk): shortcut=False path only; the shortcut concat+final_conv branch is omitted.

    # both task heads (1x1 conv + channel softmax) in one fused, tiled pallas_call
    x_logits, y_logits, x_softmax, y_softmax = heads_forward(
        x, y, params["net1_head"], params["net2_head"])

    # dataset == 'nyu_v2': bilinear upsample logits back to input resolution
    x_out = bilinear_resize_nhwc(x_logits, H, W)
    y_out = bilinear_resize_nhwc(y_logits, H, W)

    to_nchw = lambda t: jnp.transpose(t, (0, 3, 1, 2))
    return (to_nchw(x_out), to_nchw(y_out),
            to_nchw(x_softmax), to_nchw(y_softmax))


# ----------------------------------------------------------------------------
if __name__ == "__main__":
    N, C, H, W = 2, 4, 16, 16
    stage_channels = [8, 16]
    num_classes = 5

    params = make_params(C, stage_channels, num_classes)
    x = jax.random.normal(jax.random.PRNGKey(0), (N, C, H, W), jnp.float32)

    fwd = jax.jit(lambda inp: nddrnet_forward(inp, params))
    x_out, y_out, x_sm, y_sm = fwd(x)
    jax.block_until_ready((x_out, y_out, x_sm, y_sm))

    assert x_out.shape == (N, num_classes, H, W)
    assert y_out.shape == (N, num_classes, H, W)
    assert x_sm.shape == (N, num_classes, H // 4, W // 4)
    assert y_sm.shape == (N, num_classes, H // 4, W // 4)
    assert bool(jnp.all(jnp.isfinite(x_out))) and bool(jnp.all(jnp.isfinite(y_out)))
    print("KERNEL_OK")
</pallas_src>

<mosaic_0001>
module attributes {stable_mosaic.version = 11 : i64} {
  func.func @_stage_nddr_kernel(%arg0: i32, %arg1: memref<128x4xf32, #tpu.memory_space<vmem>>, %arg2: memref<128x4xf32, #tpu.memory_space<vmem>>, %arg3: memref<4x8xf32, #tpu.memory_space<vmem>>, %arg4: memref<4x8xf32, #tpu.memory_space<vmem>>, %arg5: memref<8x16xf32, #tpu.memory_space<vmem>>, %arg6: memref<8x16xf32, #tpu.memory_space<vmem>>, %arg7: memref<128x16xf32, #tpu.memory_space<vmem>>, %arg8: memref<2x16xf32, #tpu.memory_space<vmem>>) attributes {dimension_semantics = [#tpu.dimension_semantics<arbitrary>], iteration_bounds = array<i64: 1>, scalar_prefetch = 0 : i64, scratch_operands = 0 : i64, tpu.core_type = #tpu.core_type<tc>, window_params = [{transform_indices = @transform_0, window_bounds = array<i64: 128, 4>}, {transform_indices = @transform_1, window_bounds = array<i64: 128, 4>}, {pipeline_mode = #tpu.pipeline_mode<synchronous>, transform_indices = @transform_2, window_bounds = array<i64: 4, 8>}, {pipeline_mode = #tpu.pipeline_mode<synchronous>, transform_indices = @transform_3, window_bounds = array<i64: 4, 8>}, {pipeline_mode = #tpu.pipeline_mode<synchronous>, transform_indices = @transform_4, window_bounds = array<i64: 8, 16>}, {pipeline_mode = #tpu.pipeline_mode<synchronous>, transform_indices = @transform_5, window_bounds = array<i64: 8, 16>}, {transform_indices = @transform_6, window_bounds = array<i64: 128, 16>}, {pipeline_mode = #tpu.pipeline_mode<synchronous>, transform_indices = @transform_7, window_bounds = array<i64: 2, 16>}]} {
    %c0_i32 = arith.constant 0 : i32
    %0 = arith.cmpi eq, %arg0, %c0_i32 : i32
    %1 = arith.extui %0 : i1 to i32
    %c0_i32_0 = arith.constant 0 : i32
    %2 = arith.cmpi ne, %1, %c0_i32_0 : i32
    scf.if %2 {
      %cst_25 = arith.constant 0.000000e+00 : f32
      %28 = vector.broadcast %cst_25 : f32 to vector<2x16xf32>
      %c0_26 = arith.constant 0 : index
      %c0_27 = arith.constant 0 : index
      %29 = vector.load %arg8[%c0_26, %c0_27] : memref<2x16xf32, #tpu.memory_space<vmem>>, vector<2x16xf32>
      tpu.vector_store %arg8[%c0_26, %c0_27], %28 {strides = array<i32>} : memref<2x16xf32, #tpu.memory_space<vmem>>, vector<2x16xf32>,
    } else {
    }
    %c0 = arith.constant 0 : index
    %c0_1 = arith.constant 0 : index
    %3 = vector.load %arg1[%c0, %c0_1] : memref<128x4xf32, #tpu.memory_space<vmem>>, vector<128x4xf32>
    %c0_2 = arith.constant 0 : index
    %c0_3 = arith.constant 0 : index
    %4 = vector.load %arg3[%c0_2, %c0_3] : memref<4x8xf32, #tpu.memory_space<vmem>>, vector<4x8xf32>
    %cst = arith.constant dense<0.000000e+00> : vector<128x8xf32>
    %5 = tpu.matmul %3, %4, %cst {dimension_numbers = #tpu.dot_dimension_numbers<[1], [0], [0], [1], [0, 0, 1, 1], [], []>} : vector<128x4xf32>, vector<4x8xf32>, vector<128x8xf32> -> vector<128x8xf32>
    %cst_4 = arith.constant 0.000000e+00 : f32
    %6 = vector.broadcast %cst_4 : f32 to vector<128x8xf32>
    %7 = arith.maximumf %5, %6 : vector<128x8xf32>
    %c0_5 = arith.constant 0 : index
    %c0_6 = arith.constant 0 : index
    %8 = vector.load %arg2[%c0_5, %c0_6] : memref<128x4xf32, #tpu.memory_space<vmem>>, vector<128x4xf32>
    %c0_7 = arith.constant 0 : index
    %c0_8 = arith.constant 0 : index
    %9 = vector.load %arg4[%c0_7, %c0_8] : memref<4x8xf32, #tpu.memory_space<vmem>>, vector<4x8xf32>
    %cst_9 = arith.constant dense<0.000000e+00> : vector<128x8xf32>
    %10 = tpu.matmul %8, %9, %cst_9 {dimension_numbers = #tpu.dot_dimension_numbers<[1], [0], [0], [1], [0, 0, 1, 1], [], []>} : vector<128x4xf32>, vector<4x8xf32>, vector<128x8xf32> -> vector<128x8xf32>
    %cst_10 = arith.constant 0.000000e+00 : f32
    %11 = vector.broadcast %cst_10 : f32 to vector<128x8xf32>
    %12 = arith.maximumf %10, %11 : vector<128x8xf32>
    %c0_11 = arith.constant 0 : index
    %c0_12 = arith.constant 0 : index
    %13 = vector.load %arg5[%c0_11, %c0_12] : memref<8x16xf32, #tpu.memory_space<vmem>>, vector<8x16xf32>
    %cst_13 = arith.constant dense<0.000000e+00> : vector<128x16xf32>
    %14 = tpu.matmul %7, %13, %cst_13 {dimension_numbers = #tpu.dot_dimension_numbers<[1], [0], [0], [1], [0, 0, 1, 1], [], []>} : vector<128x8xf32>, vector<8x16xf32>, vector<128x16xf32> -> vector<128x16xf32>
    %c0_14 = arith.constant 0 : index
    %c0_15 = arith.constant 0 : index
    %15 = vector.load %arg6[%c0_14, %c0_15] : memref<8x16xf32, #tpu.memory_space<vmem>>, vector<8x16xf32>
    %cst_16 = arith.constant dense<0.000000e+00> : vector<128x16xf32>
    %16 = tpu.matmul %12, %15, %cst_16 {dimension_numbers = #tpu.dot_dimension_numbers<[1], [0], [0], [1], [0, 0, 1, 1], [], []>} : vector<128x8xf32>, vector<8x16xf32>, vector<128x16xf32> -> vector<128x16xf32>
    %17 = arith.addf %14, %16 : vector<128x16xf32>
    %c0_17 = arith.constant 0 : index
    %c0_18 = arith.constant 0 : index
    %18 = vector.load %arg7[%c0_17, %c0_18] : memref<128x16xf32, #tpu.memory_space<vmem>>, vector<128x16xf32>
    tpu.vector_store %arg7[%c0_17, %c0_18], %17 {strides = array<i32>} : memref<128x16xf32, #tpu.memory_space<vmem>>, vector<128x16xf32>,
    %cst_19 = arith.constant dense<0.000000e+00> : vector<16xf32>
    %19 = vector.multi_reduction <add>, %17, %cst_19 [0] : vector<128x16xf32> to vector<16xf32>
    %20 = vector.shape_cast %19 : vector<16xf32> to vector<1x16xf32>
    %21 = arith.mulf %17, %17 : vector<128x16xf32>
    %cst_20 = arith.constant dense<0.000000e+00> : vector<16xf32>
    %22 = vector.multi_reduction <add>, %21, %cst_20 [0] : vector<128x16xf32> to vector<16xf32>
    %23 = vector.shape_cast %22 : vector<16xf32> to vector<1x16xf32>
    %c0_21 = arith.constant 0 : index
    %c0_22 = arith.constant 0 : index
    %24 = vector.load %arg8[%c0_21, %c0_22] : memref<2x16xf32, #tpu.memory_space<vmem>>, vector<2x16xf32>
    %25 = tpu.concatenate %20, %23 in 0 : vector<1x16xf32>, vector<1x16xf32> -> vector<2x16xf32>
    %26 = arith.addf %24, %25 : vector<2x16xf32>
    %c0_23 = arith.constant 0 : index
    %c0_24 = arith.constant 0 : index
    %27 = vector.load %arg8[%c0_23, %c0_24] : memref<2x16xf32, #tpu.memory_space<vmem>>, vector<2x16xf32>
    tpu.vector_store %arg8[%c0_23, %c0_24], %26 {strides = array<i32>} : memref<2x16xf32, #tpu.memory_space<vmem>>, vector<2x16xf32>,
    return
  }
  func.func @transform_0(%arg0: i32) -> (i32, i32) {
    %c0_i32 = arith.constant 0 : i32
    %c0_i32_0 = arith.constant 0 : i32
    return %arg0, %c0_i32 : i32, i32
  }
  func.func @transform_1(%arg0: i32) -> (i32, i32) {
    %c0_i32 = arith.constant 0 : i32
    %c0_i32_0 = arith.constant 0 : i32
    return %arg0, %c0_i32 : i32, i32
  }
  func.func @transform_2(%arg0: i32) -> (i32, i32) {
    %c0_i32 = arith.constant 0 : i32
    %c0_i32_0 = arith.constant 0 : i32
    %c0_i32_1 = arith.constant 0 : i32
    return %c0_i32, %c0_i32_0 : i32, i32
  }
  func.func @transform_3(%arg0: i32) -> (i32, i32) {
    %c0_i32 = arith.constant 0 : i32
    %c0_i32_0 = arith.constant 0 : i32
    %c0_i32_1 = arith.constant 0 : i32
    return %c0_i32, %c0_i32_0 : i32, i32
  }
  func.func @transform_4(%arg0: i32) -> (i32, i32) {
    %c0_i32 = arith.constant 0 : i32
    %c0_i32_0 = arith.constant 0 : i32
    %c0_i32_1 = arith.constant 0 : i32
    return %c0_i32, %c0_i32_0 : i32, i32
  }
  func.func @transform_5(%arg0: i32) -> (i32, i32) {
    %c0_i32 = arith.constant 0 : i32
    %c0_i32_0 = arith.constant 0 : i32
    %c0_i32_1 = arith.constant 0 : i32
    return %c0_i32, %c0_i32_0 : i32, i32
  }
  func.func @transform_6(%arg0: i32) -> (i32, i32) {
    %c0_i32 = arith.constant 0 : i32
    %c0_i32_0 = arith.constant 0 : i32
    return %arg0, %c0_i32 : i32, i32
  }
  func.func @transform_7(%arg0: i32) -> (i32, i32) {
    %c0_i32 = arith.constant 0 : i32
    %c0_i32_0 = arith.constant 0 : i32
    %c0_i32_1 = arith.constant 0 : i32
    return %c0_i32, %c0_i32_0 : i32, i32
  }
}

module attributes {stable_mosaic.version = 11 : i64} {
  func.func @_bn_relu_kernel(%arg0: i32, %arg1: memref<128x16xf32, #tpu.memory_space<vmem>>, %arg2: memref<1x16xf32, #tpu.memory_space<vmem>>, %arg3: memref<1x16xf32, #tpu.memory_space<vmem>>, %arg4: memref<128x16xf32, #tpu.memory_space<vmem>>) attributes {dimension_semantics = [#tpu.dimension_semantics<parallel>], iteration_bounds = array<i64: 1>, scalar_prefetch = 0 : i64, scratch_operands = 0 : i64, tpu.core_type = #tpu.core_type<tc>, window_params = [{transform_indices = @transform_0, window_bounds = array<i64: 128, 16>}, {pipeline_mode = #tpu.pipeline_mode<synchronous>, transform_indices = @transform_1, window_bounds = array<i64: 1, 16>}, {pipeline_mode = #tpu.pipeline_mode<synchronous>, transform_indices = @transform_2, window_bounds = array<i64: 1, 16>}, {transform_indices = @transform_3, window_bounds = array<i64: 128, 16>}]} {
    %c0 = arith.constant 0 : index
    %c0_0 = arith.constant 0 : index
    %0 = vector.load %arg1[%c0, %c0_0] : memref<128x16xf32, #tpu.memory_space<vmem>>, vector<128x16xf32>
    %c0_1 = arith.constant 0 : index
    %c0_2 = arith.constant 0 : index
    %1 = vector.load %arg2[%c0_1, %c0_2] : memref<1x16xf32, #tpu.memory_space<vmem>>, vector<1x16xf32>
    %2 = vector.broadcast %1 : vector<1x16xf32> to vector<128x16xf32>
    %3 = arith.mulf %0, %2 : vector<128x16xf32>
    %c0_3 = arith.constant 0 : index
    %c0_4 = arith.constant 0 : index
    %4 = vector.load %arg3[%c0_3, %c0_4] : memref<1x16xf32, #tpu.memory_space<vmem>>, vector<1x16xf32>
    %5 = vector.broadcast %4 : vector<1x16xf32> to vector<128x16xf32>
    %6 = arith.addf %3, %5 : vector<128x16xf32>
    %cst = arith.constant 0.000000e+00 : f32
    %7 = vector.broadcast %cst : f32 to vector<128x16xf32>
    %8 = arith.maximumf %6, %7 : vector<128x16xf32>
    %c0_5 = arith.constant 0 : index
    %c0_6 = arith.constant 0 : index
    %9 = vector.load %arg4[%c0_5, %c0_6] : memref<128x16xf32, #tpu.memory_space<vmem>>, vector<128x16xf32>
    tpu.vector_store %arg4[%c0_5, %c0_6], %8 {strides = array<i32>} : memref<128x16xf32, #tpu.memory_space<vmem>>, vector<128x16xf32>,
    return
  }
  func.func @transform_0(%arg0: i32) -> (i32, i32) {
    %c0_i32 = arith.constant 0 : i32
    %c0_i32_0 = arith.constant 0 : i32
    return %arg0, %c0_i32 : i32, i32
  }
  func.func @transform_1(%arg0: i32) -> (i32, i32) {
    %c0_i32 = arith.constant 0 : i32
    %c0_i32_0 = arith.constant 0 : i32
    %c0_i32_1 = arith.constant 0 : i32
    return %c0_i32, %c0_i32_0 : i32, i32
  }
  func.func @transform_2(%arg0: i32) -> (i32, i32) {
    %c0_i32 = arith.constant 0 : i32
    %c0_i32_0 = arith.constant 0 : i32
    %c0_i32_1 = arith.constant 0 : i32
    return %c0_i32, %c0_i32_0 : i32, i32
  }
  func.func @transform_3(%arg0: i32) -> (i32, i32) {
    %c0_i32 = arith.constant 0 : i32
    %c0_i32_0 = arith.constant 0 : i32
    return %arg0, %c0_i32 : i32, i32
  }
}

module attributes {stable_mosaic.version = 11 : i64} {
  func.func @_stage_nddr_kernel(%arg0: i32, %arg1: memref<32x8xf32, #tpu.memory_space<vmem>>, %arg2: memref<32x8xf32, #tpu.memory_space<vmem>>, %arg3: memref<8x16xf32, #tpu.memory_space<vmem>>, %arg4: memref<8x16xf32, #tpu.memory_space<vmem>>, %arg5: memref<16x32xf32, #tpu.memory_space<vmem>>, %arg6: memref<16x32xf32, #tpu.memory_space<vmem>>, %arg7: memref<32x32xf32, #tpu.memory_space<vmem>>, %arg8: memref<2x32xf32, #tpu.memory_space<vmem>>) attributes {dimension_semantics = [#tpu.dimension_semantics<arbitrary>], iteration_bounds = array<i64: 1>, scalar_prefetch = 0 : i64, scratch_operands = 0 : i64, tpu.core_type = #tpu.core_type<tc>, window_params = [{transform_indices = @transform_0, window_bounds = array<i64: 32, 8>}, {transform_indices = @transform_1, window_bounds = array<i64: 32, 8>}, {pipeline_mode = #tpu.pipeline_mode<synchronous>, transform_indices = @transform_2, window_bounds = array<i64: 8, 16>}, {pipeline_mode = #tpu.pipeline_mode<synchronous>, transform_indices = @transform_3, window_bounds = array<i64: 8, 16>}, {pipeline_mode = #tpu.pipeline_mode<synchronous>, transform_indices = @transform_4, window_bounds = array<i64: 16, 32>}, {pipeline_mode = #tpu.pipeline_mode<synchronous>, transform_indices = @transform_5, window_bounds = array<i64: 16, 32>}, {transform_indices = @transform_6, window_bounds = array<i64: 32, 32>}, {pipeline_mode = #tpu.pipeline_mode<synchronous>, transform_indices = @transform_7, window_bounds = array<i64: 2, 32>}]} {
    %c0_i32 = arith.constant 0 : i32
    %0 = arith.cmpi eq, %arg0, %c0_i32 : i32
    %1 = arith.extui %0 : i1 to i32
    %c0_i32_0 = arith.constant 0 : i32
    %2 = arith.cmpi ne, %1, %c0_i32_0 : i32
    scf.if %2 {
      %cst_25 = arith.constant 0.000000e+00 : f32
      %28 = vector.broadcast %cst_25 : f32 to vector<2x32xf32>
      %c0_26 = arith.constant 0 : index
      %c0_27 = arith.constant 0 : index
      %29 = vector.load %arg8[%c0_26, %c0_27] : memref<2x32xf32, #tpu.memory_space<vmem>>, vector<2x32xf32>
      tpu.vector_store %arg8[%c0_26, %c0_27], %28 {strides = array<i32>} : memref<2x32xf32, #tpu.memory_space<vmem>>, vector<2x32xf32>,
    } else {
    }
    %c0 = arith.constant 0 : index
    %c0_1 = arith.constant 0 : index
    %3 = vector.load %arg1[%c0, %c0_1] : memref<32x8xf32, #tpu.memory_space<vmem>>, vector<32x8xf32>
    %c0_2 = arith.constant 0 : index
    %c0_3 = arith.constant 0 : index
    %4 = vector.load %arg3[%c0_2, %c0_3] : memref<8x16xf32, #tpu.memory_space<vmem>>, vector<8x16xf32>
    %cst = arith.constant dense<0.000000e+00> : vector<32x16xf32>
    %5 = tpu.matmul %3, %4, %cst {dimension_numbers = #tpu.dot_dimension_numbers<[1], [0], [0], [1], [0, 0, 1, 1], [], []>} : vector<32x8xf32>, vector<8x16xf32>, vector<32x16xf32> -> vector<32x16xf32>
    %cst_4 = arith.constant 0.000000e+00 : f32
    %6 = vector.broadcast %cst_4 : f32 to vector<32x16xf32>
    %7 = arith.maximumf %5, %6 : vector<32x16xf32>
    %c0_5 = arith.constant 0 : index
    %c0_6 = arith.constant 0 : index
    %8 = vector.load %arg2[%c0_5, %c0_6] : memref<32x8xf32, #tpu.memory_space<vmem>>, vector<32x8xf32>
    %c0_7 = arith.constant 0 : index
    %c0_8 = arith.constant 0 : index
    %9 = vector.load %arg4[%c0_7, %c0_8] : memref<8x16xf32, #tpu.memory_space<vmem>>, vector<8x16xf32>
    %cst_9 = arith.constant dense<0.000000e+00> : vector<32x16xf32>
    %10 = tpu.matmul %8, %9, %cst_9 {dimension_numbers = #tpu.dot_dimension_numbers<[1], [0], [0], [1], [0, 0, 1, 1], [], []>} : vector<32x8xf32>, vector<8x16xf32>, vector<32x16xf32> -> vector<32x16xf32>
    %cst_10 = arith.constant 0.000000e+00 : f32
    %11 = vector.broadcast %cst_10 : f32 to vector<32x16xf32>
    %12 = arith.maximumf %10, %11 : vector<32x16xf32>
    %c0_11 = arith.constant 0 : index
    %c0_12 = arith.constant 0 : index
    %13 = vector.load %arg5[%c0_11, %c0_12] : memref<16x32xf32, #tpu.memory_space<vmem>>, vector<16x32xf32>
    %cst_13 = arith.constant dense<0.000000e+00> : vector<32x32xf32>
    %14 = tpu.matmul %7, %13, %cst_13 {dimension_numbers = #tpu.dot_dimension_numbers<[1], [0], [0], [1], [0, 0, 1, 1], [], []>} : vector<32x16xf32>, vector<16x32xf32>, vector<32x32xf32> -> vector<32x32xf32>
    %c0_14 = arith.constant 0 : index
    %c0_15 = arith.constant 0 : index
    %15 = vector.load %arg6[%c0_14, %c0_15] : memref<16x32xf32, #tpu.memory_space<vmem>>, vector<16x32xf32>
    %cst_16 = arith.constant dense<0.000000e+00> : vector<32x32xf32>
    %16 = tpu.matmul %12, %15, %cst_16 {dimension_numbers = #tpu.dot_dimension_numbers<[1], [0], [0], [1], [0, 0, 1, 1], [], []>} : vector<32x16xf32>, vector<16x32xf32>, vector<32x32xf32> -> vector<32x32xf32>
    %17 = arith.addf %14, %16 : vector<32x32xf32>
    %c0_17 = arith.constant 0 : index
    %c0_18 = arith.constant 0 : index
    %18 = vector.load %arg7[%c0_17, %c0_18] : memref<32x32xf32, #tpu.memory_space<vmem>>, vector<32x32xf32>
    tpu.vector_store %arg7[%c0_17, %c0_18], %17 {strides = array<i32>} : memref<32x32xf32, #tpu.memory_space<vmem>>, vector<32x32xf32>,
    %cst_19 = arith.constant dense<0.000000e+00> : vector<32xf32>
    %19 = vector.multi_reduction <add>, %17, %cst_19 [0] : vector<32x32xf32> to vector<32xf32>
    %20 = vector.shape_cast %19 : vector<32xf32> to vector<1x32xf32>
    %21 = arith.mulf %17, %17 : vector<32x32xf32>
    %cst_20 = arith.constant dense<0.000000e+00> : vector<32xf32>
    %22 = vector.multi_reduction <add>, %21, %cst_20 [0] : vector<32x32xf32> to vector<32xf32>
    %23 = vector.shape_cast %22 : vector<32xf32> to vector<1x32xf32>
    %c0_21 = arith.constant 0 : index
    %c0_22 = arith.constant 0 : index
    %24 = vector.load %arg8[%c0_21, %c0_22] : memref<2x32xf32, #tpu.memory_space<vmem>>, vector<2x32xf32>
    %25 = tpu.concatenate %20, %23 in 0 : vector<1x32xf32>, vector<1x32xf32> -> vector<2x32xf32>
    %26 = arith.addf %24, %25 : vector<2x32xf32>
    %c0_23 = arith.constant 0 : index
    %c0_24 = arith.constant 0 : index
    %27 = vector.load %arg8[%c0_23, %c0_24] : memref<2x32xf32, #tpu.memory_space<vmem>>, vector<2x32xf32>
    tpu.vector_store %arg8[%c0_23, %c0_24], %26 {strides = array<i32>} : memref<2x32xf32, #tpu.memory_space<vmem>>, vector<2x32xf32>,
    return
  }
  func.func @transform_0(%arg0: i32) -> (i32, i32) {
    %c0_i32 = arith.constant 0 : i32
    %c0_i32_0 = arith.constant 0 : i32
    return %arg0, %c0_i32 : i32, i32
  }
  func.func @transform_1(%arg0: i32) -> (i32, i32) {
    %c0_i32 = arith.constant 0 : i32
    %c0_i32_0 = arith.constant 0 : i32
    return %arg0, %c0_i32 : i32, i32
  }
  func.func @transform_2(%arg0: i32) -> (i32, i32) {
    %c0_i32 = arith.constant 0 : i32
    %c0_i32_0 = arith.constant 0 : i32
    %c0_i32_1 = arith.constant 0 : i32
    return %c0_i32, %c0_i32_0 : i32, i32
  }
  func.func @transform_3(%arg0: i32) -> (i32, i32) {
    %c0_i32 = arith.constant 0 : i32
    %c0_i32_0 = arith.constant 0 : i32
    %c0_i32_1 = arith.constant 0 : i32
    return %c0_i32, %c0_i32_0 : i32, i32
  }
  func.func @transform_4(%arg0: i32) -> (i32, i32) {
    %c0_i32 = arith.constant 0 : i32
    %c0_i32_0 = arith.constant 0 : i32
    %c0_i32_1 = arith.constant 0 : i32
    return %c0_i32, %c0_i32_0 : i32, i32
  }
  func.func @transform_5(%arg0: i32) -> (i32, i32) {
    %c0_i32 = arith.constant 0 : i32
    %c0_i32_0 = arith.constant 0 : i32
    %c0_i32_1 = arith.constant 0 : i32
    return %c0_i32, %c0_i32_0 : i32, i32
  }
  func.func @transform_6(%arg0: i32) -> (i32, i32) {
    %c0_i32 = arith.constant 0 : i32
    %c0_i32_0 = arith.constant 0 : i32
    return %arg0, %c0_i32 : i32, i32
  }
  func.func @transform_7(%arg0: i32) -> (i32, i32) {
    %c0_i32 = arith.constant 0 : i32
    %c0_i32_0 = arith.constant 0 : i32
    %c0_i32_1 = arith.constant 0 : i32
    return %c0_i32, %c0_i32_0 : i32, i32
  }
}

module attributes {stable_mosaic.version = 11 : i64} {
  func.func @_bn_relu_kernel(%arg0: i32, %arg1: memref<32x32xf32, #tpu.memory_space<vmem>>, %arg2: memref<1x32xf32, #tpu.memory_space<vmem>>, %arg3: memref<1x32xf32, #tpu.memory_space<vmem>>, %arg4: memref<32x32xf32, #tpu.memory_space<vmem>>) attributes {dimension_semantics = [#tpu.dimension_semantics<parallel>], iteration_bounds = array<i64: 1>, scalar_prefetch = 0 : i64, scratch_operands = 0 : i64, tpu.core_type = #tpu.core_type<tc>, window_params = [{transform_indices = @transform_0, window_bounds = array<i64: 32, 32>}, {pipeline_mode = #tpu.pipeline_mode<synchronous>, transform_indices = @transform_1, window_bounds = array<i64: 1, 32>}, {pipeline_mode = #tpu.pipeline_mode<synchronous>, transform_indices = @transform_2, window_bounds = array<i64: 1, 32>}, {transform_indices = @transform_3, window_bounds = array<i64: 32, 32>}]} {
    %c0 = arith.constant 0 : index
    %c0_0 = arith.constant 0 : index
    %0 = vector.load %arg1[%c0, %c0_0] : memref<32x32xf32, #tpu.memory_space<vmem>>, vector<32x32xf32>
    %c0_1 = arith.constant 0 : index
    %c0_2 = arith.constant 0 : index
    %1 = vector.load %arg2[%c0_1, %c0_2] : memref<1x32xf32, #tpu.memory_space<vmem>>, vector<1x32xf32>
    %2 = vector.broadcast %1 : vector<1x32xf32> to vector<32x32xf32>
    %3 = arith.mulf %0, %2 : vector<32x32xf32>
    %c0_3 = arith.constant 0 : index
    %c0_4 = arith.constant 0 : index
    %4 = vector.load %arg3[%c0_3, %c0_4] : memref<1x32xf32, #tpu.memory_space<vmem>>, vector<1x32xf32>
    %5 = vector.broadcast %4 : vector<1x32xf32> to vector<32x32xf32>
    %6 = arith.addf %3, %5 : vector<32x32xf32>
    %cst = arith.constant 0.000000e+00 : f32
    %7 = vector.broadcast %cst : f32 to vector<32x32xf32>
    %8 = arith.maximumf %6, %7 : vector<32x32xf32>
    %c0_5 = arith.constant 0 : index
    %c0_6 = arith.constant 0 : index
    %9 = vector.load %arg4[%c0_5, %c0_6] : memref<32x32xf32, #tpu.memory_space<vmem>>, vector<32x32xf32>
    tpu.vector_store %arg4[%c0_5, %c0_6], %8 {strides = array<i32>} : memref<32x32xf32, #tpu.memory_space<vmem>>, vector<32x32xf32>,
    return
  }
  func.func @transform_0(%arg0: i32) -> (i32, i32) {
    %c0_i32 = arith.constant 0 : i32
    %c0_i32_0 = arith.constant 0 : i32
    return %arg0, %c0_i32 : i32, i32
  }
  func.func @transform_1(%arg0: i32) -> (i32, i32) {
    %c0_i32 = arith.constant 0 : i32
    %c0_i32_0 = arith.constant 0 : i32
    %c0_i32_1 = arith.constant 0 : i32
    return %c0_i32, %c0_i32_0 : i32, i32
  }
  func.func @transform_2(%arg0: i32) -> (i32, i32) {
    %c0_i32 = arith.constant 0 : i32
    %c0_i32_0 = arith.constant 0 : i32
    %c0_i32_1 = arith.constant 0 : i32
    return %c0_i32, %c0_i32_0 : i32, i32
  }
  func.func @transform_3(%arg0: i32) -> (i32, i32) {
    %c0_i32 = arith.constant 0 : i32
    %c0_i32_0 = arith.constant 0 : i32
    return %arg0, %c0_i32 : i32, i32
  }
}

module attributes {stable_mosaic.version = 11 : i64} {
  func.func @_heads_kernel(%arg0: i32, %arg1: memref<32x16xf32, #tpu.memory_space<vmem>>, %arg2: memref<32x16xf32, #tpu.memory_space<vmem>>, %arg3: memref<16x5xf32, #tpu.memory_space<vmem>>, %arg4: memref<16x5xf32, #tpu.memory_space<vmem>>, %arg5: memref<32x5xf32, #tpu.memory_space<vmem>>, %arg6: memref<32x5xf32, #tpu.memory_space<vmem>>, %arg7: memref<32x5xf32, #tpu.memory_space<vmem>>, %arg8: memref<32x5xf32, #tpu.memory_space<vmem>>) attributes {dimension_semantics = [#tpu.dimension_semantics<parallel>], iteration_bounds = array<i64: 1>, scalar_prefetch = 0 : i64, scratch_operands = 0 : i64, tpu.core_type = #tpu.core_type<tc>, window_params = [{transform_indices = @transform_0, window_bounds = array<i64: 32, 16>}, {transform_indices = @transform_1, window_bounds = array<i64: 32, 16>}, {pipeline_mode = #tpu.pipeline_mode<synchronous>, transform_indices = @transform_2, window_bounds = array<i64: 16, 5>}, {pipeline_mode = #tpu.pipeline_mode<synchronous>, transform_indices = @transform_3, window_bounds = array<i64: 16, 5>}, {transform_indices = @transform_4, window_bounds = array<i64: 32, 5>}, {transform_indices = @transform_5, window_bounds = array<i64: 32, 5>}, {transform_indices = @transform_6, window_bounds = array<i64: 32, 5>}, {transform_indices = @transform_7, window_bounds = array<i64: 32, 5>}]} {
    %c0 = arith.constant 0 : index
    %c0_0 = arith.constant 0 : index
    %0 = vector.load %arg1[%c0, %c0_0] : memref<32x16xf32, #tpu.memory_space<vmem>>, vector<32x16xf32>
    %c0_1 = arith.constant 0 : index
    %c0_2 = arith.constant 0 : index
    %1 = vector.load %arg3[%c0_1, %c0_2] : memref<16x5xf32, #tpu.memory_space<vmem>>, vector<16x5xf32>
    %cst = arith.constant dense<0.000000e+00> : vector<32x5xf32>
    %2 = tpu.matmul %0, %1, %cst {dimension_numbers = #tpu.dot_dimension_numbers<[1], [0], [0], [1], [0, 0, 1, 1], [], []>} : vector<32x16xf32>, vector<16x5xf32>, vector<32x5xf32> -> vector<32x5xf32>
    %c0_3 = arith.constant 0 : index
    %c0_4 = arith.constant 0 : index
    %3 = vector.load %arg5[%c0_3, %c0_4] : memref<32x5xf32, #tpu.memory_space<vmem>>, vector<32x5xf32>
    tpu.vector_store %arg5[%c0_3, %c0_4], %2 {strides = array<i32>} : memref<32x5xf32, #tpu.memory_space<vmem>>, vector<32x5xf32>,
    %cst_5 = arith.constant dense<0xFF800000> : vector<32xf32>
    %4 = vector.multi_reduction <maximumf>, %2, %cst_5 [1] : vector<32x5xf32> to vector<32xf32>
    %5 = vector.shape_cast %4 : vector<32xf32> to vector<32x1xf32>
    %6 = vector.broadcast %5 : vector<32x1xf32> to vector<32x5xf32>
    %7 = arith.subf %2, %6 : vector<32x5xf32>
    %8 = math.exp %7 : vector<32x5xf32>
    %cst_6 = arith.constant dense<0.000000e+00> : vector<32xf32>
    %9 = vector.multi_reduction <add>, %8, %cst_6 [1] : vector<32x5xf32> to vector<32xf32>
    %10 = vector.shape_cast %9 : vector<32xf32> to vector<32x1xf32>
    %11 = vector.broadcast %10 : vector<32x1xf32> to vector<32x5xf32>
    %12 = arith.divf %8, %11 : vector<32x5xf32>
    %c0_7 = arith.constant 0 : index
    %c0_8 = arith.constant 0 : index
    %13 = vector.load %arg7[%c0_7, %c0_8] : memref<32x5xf32, #tpu.memory_space<vmem>>, vector<32x5xf32>
    tpu.vector_store %arg7[%c0_7, %c0_8], %12 {strides = array<i32>} : memref<32x5xf32, #tpu.memory_space<vmem>>, vector<32x5xf32>,
    %c0_9 = arith.constant 0 : index
    %c0_10 = arith.constant 0 : index
    %14 = vector.load %arg2[%c0_9, %c0_10] : memref<32x16xf32, #tpu.memory_space<vmem>>, vector<32x16xf32>
    %c0_11 = arith.constant 0 : index
    %c0_12 = arith.constant 0 : index
    %15 = vector.load %arg4[%c0_11, %c0_12] : memref<16x5xf32, #tpu.memory_space<vmem>>, vector<16x5xf32>
    %cst_13 = arith.constant dense<0.000000e+00> : vector<32x5xf32>
    %16 = tpu.matmul %14, %15, %cst_13 {dimension_numbers = #tpu.dot_dimension_numbers<[1], [0], [0], [1], [0, 0, 1, 1], [], []>} : vector<32x16xf32>, vector<16x5xf32>, vector<32x5xf32> -> vector<32x5xf32>
    %c0_14 = arith.constant 0 : index
    %c0_15 = arith.constant 0 : index
    %17 = vector.load %arg6[%c0_14, %c0_15] : memref<32x5xf32, #tpu.memory_space<vmem>>, vector<32x5xf32>
    tpu.vector_store %arg6[%c0_14, %c0_15], %16 {strides = array<i32>} : memref<32x5xf32, #tpu.memory_space<vmem>>, vector<32x5xf32>,
    %cst_16 = arith.constant dense<0xFF800000> : vector<32xf32>
    %18 = vector.multi_reduction <maximumf>, %16, %cst_16 [1] : vector<32x5xf32> to vector<32xf32>
    %19 = vector.shape_cast %18 : vector<32xf32> to vector<32x1xf32>
    %20 = vector.broadcast %19 : vector<32x1xf32> to vector<32x5xf32>
    %21 = arith.subf %16, %20 : vector<32x5xf32>
    %22 = math.exp %21 : vector<32x5xf32>
    %cst_17 = arith.constant dense<0.000000e+00> : vector<32xf32>
    %23 = vector.multi_reduction <add>, %22, %cst_17 [1] : vector<32x5xf32> to vector<32xf32>
    %24 = vector.shape_cast %23 : vector<32xf32> to vector<32x1xf32>
    %25 = vector.broadcast %24 : vector<32x1xf32> to vector<32x5xf32>
    %26 = arith.divf %22, %25 : vector<32x5xf32>
    %c0_18 = arith.constant 0 : index
    %c0_19 = arith.constant 0 : index
    %27 = vector.load %arg8[%c0_18, %c0_19] : memref<32x5xf32, #tpu.memory_space<vmem>>, vector<32x5xf32>
    tpu.vector_store %arg8[%c0_18, %c0_19], %26 {strides = array<i32>} : memref<32x5xf32, #tpu.memory_space<vmem>>, vector<32x5xf32>,
    return
  }
  func.func @transform_0(%arg0: i32) -> (i32, i32) {
    %c0_i32 = arith.constant 0 : i32
    %c0_i32_0 = arith.constant 0 : i32
    return %arg0, %c0_i32 : i32, i32
  }
  func.func @transform_1(%arg0: i32) -> (i32, i32) {
    %c0_i32 = arith.constant 0 : i32
    %c0_i32_0 = arith.constant 0 : i32
    return %arg0, %c0_i32 : i32, i32
  }
  func.func @transform_2(%arg0: i32) -> (i32, i32) {
    %c0_i32 = arith.constant 0 : i32
    %c0_i32_0 = arith.constant 0 : i32
    %c0_i32_1 = arith.constant 0 : i32
    return %c0_i32, %c0_i32_0 : i32, i32
  }
  func.func @transform_3(%arg0: i32) -> (i32, i32) {
    %c0_i32 = arith.constant 0 : i32
    %c0_i32_0 = arith.constant 0 : i32
    %c0_i32_1 = arith.constant 0 : i32
    return %c0_i32, %c0_i32_0 : i32, i32
  }
  func.func @transform_4(%arg0: i32) -> (i32, i32) {
    %c0_i32 = arith.constant 0 : i32
    %c0_i32_0 = arith.constant 0 : i32
    return %arg0, %c0_i32 : i32, i32
  }
  func.func @transform_5(%arg0: i32) -> (i32, i32) {
    %c0_i32 = arith.constant 0 : i32
    %c0_i32_0 = arith.constant 0 : i32
    return %arg0, %c0_i32 : i32, i32
  }
  func.func @transform_6(%arg0: i32) -> (i32, i32) {
    %c0_i32 = arith.constant 0 : i32
    %c0_i32_0 = arith.constant 0 : i32
    return %arg0, %c0_i32 : i32, i32
  }
  func.func @transform_7(%arg0: i32) -> (i32, i32) {
    %c0_i32 = arith.constant 0 : i32
    %c0_i32_0 = arith.constant 0 : i32
    return %arg0, %c0_i32 : i32, i32
  }
}

</mosaic_0001>

<bundles_post_ra>
// kernel: _lambda_.6
= control target key start
LH: loop header
LB: loop body
LE: loop exit
PB: predicated region body
PF: predicated region fallthrough
CT: control target
= control target key end

     0   :  { %vm92_vm0 = vcmask 130048   ;;  %s271_s0 = inlined_call_operand.vmem [shape: f32[128,16], index: 0, kind: input, shape index: {}]   ;;  %s272_s1 = inlined_call_operand.vmem [shape: f32[1,16], index: 1, kind: input, shape index: {}]   ;;  %s273_s2 = inlined_call_operand.vmem [shape: f32[1,16], index: 2, kind: input, shape index: {}]   ;;  %s274_s3 = inlined_call_operand.vmem [shape: f32[128,16], index: 3, kind: output, shape index: {}]  }
   0x1   :  { %v14_v0 = vld [vmem:[%s271_s0] sm:$0xff]  ;;  %v15_v4 = vld [vmem:[%s271_s0 + $0x8] sm:$0xff]  ;;  %v16_v5 = vld [vmem:[%s271_s0 + $0x10] sm:$0xff] }
   0x2   :  { %v113_v1 = vld [vmem:[%s272_s1] ss:$0 sm:$0xff]  ;;  %v17_v6 = vld [vmem:[%s271_s0 + $0x18] sm:$0xff]  ;;  %v19_v11 = vld [vmem:[%s271_s0 + $0x28] sm:$0xff] }
   0x3   :  { %v144_v2 = vld [vmem:[%s273_s2] ss:$0 sm:$0xff]  ;;  %v37_v3 = vmul.f32 %v113_v1, %v14_v0  ;;  %v38_v7 = vmul.f32 %v113_v1, %v15_v4  ;;  %v39_v8 = vmul.f32 %v113_v1, %v16_v5  ;;  %v40_v9 = vmul.f32 %v113_v1, %v17_v6  ;;  %v20_v12 = vld [vmem:[%s271_s0 + $0x30] sm:$0xff]  ;;  %v21_v17 = vld [vmem:[%s271_s0 + $0x38] sm:$0xff] }
   0x4   :  { %v18_v10 = vld [vmem:[%s271_s0 + $0x20] sm:$0xff]  ;;  %v42_v15 = vmul.f32 %v113_v1, %v19_v11  ;;  %v43_v16 = vmul.f32 %v113_v1, %v20_v12  ;;  %v44_v21 = vmul.f32 %v113_v1, %v21_v17  ;;  %v23_v27 = vld [vmem:[%s271_s0 + $0x48] sm:$0xff]  ;;  %v24_v28 = vld [vmem:[%s271_s0 + $0x50] sm:$0xff] }
   0x5   :  { %v60_v13 = vadd.f32 %v144_v2, %v37_v3  ;;  %v41_v14 = vmul.f32 %v113_v1, %v18_v10  ;;  %v61_v18 = vadd.f32 %v144_v2, %v38_v7  ;;  %v62_v19 = vadd.f32 %v144_v2, %v39_v8  ;;  %v22_v22 = vld [vmem:[%s271_s0 + $0x40] sm:$0xff]  ;;  %v25_v29 = vld [vmem:[%s271_s0 + $0x58] sm:$0xff]  ;;  %v27_v35 = vld [vmem:[%s271_s0 + $0x68] sm:$0xff] }
   0x6   :  { %v63_v20 = vadd.f32 %v144_v2, %v40_v9  ;;  %v65_v25 = vadd.f32 %v144_v2, %v42_v15  ;;  %v66_v26 = vadd.f32 %v144_v2, %v43_v16  ;;  %v67_v33 = vadd.f32 %v144_v2, %v44_v21  ;;  %v26_v34 = vld [vmem:[%s271_s0 + $0x60] sm:$0xff]  ;;  %v28_v36 = vld [vmem:[%s271_s0 + $0x70] sm:$0xff]  ;;  %v29_v41 = vld [vmem:[%s271_s0 + $0x78] sm:$0xff] }
   0x7   :  { %v76_v23 = vmax.f32 %v60_v13, 0.0  ;;  %v64_v24 = vadd.f32 %v144_v2, %v41_v14  ;;  %v77_v30 = vmax.f32 %v61_v18, 0.0  ;;  %v78_v31 = vmax.f32 %v62_v19, 0.0 }
   0x8   :  { %v79_v32 = vmax.f32 %v63_v20, 0.0  ;;  %v81_v38 = vmax.f32 %v65_v25, 0.0  ;;  %v82_v39 = vmax.f32 %v66_v26, 0.0  ;;  %v45_v40 = vmul.f32 %v113_v1, %v22_v22 }
   0x9   :  { %93 = vst.msk [vmem:[%s274_s3] sm:$0xff] %vm92_vm0, %v76_v23  ;;  %v80_v37 = vmax.f32 %v64_v24, 0.0  ;;  %94 = vst.msk [vmem:[%s274_s3 + $0x8] sm:$0xff] %vm92_vm0, %v77_v30  ;;  %v83_v42 = vmax.f32 %v67_v33, 0.0  ;;  %v46_v43 = vmul.f32 %v113_v1, %v23_v27  ;;  %v47_v44 = vmul.f32 %v113_v1, %v24_v28 }
   0xa   :  { %95 = vst.msk [vmem:[%s274_s3 + $0x10] sm:$0xff] %vm92_vm0, %v78_v31  ;;  %96 = vst.msk [vmem:[%s274_s3 + $0x18] sm:$0xff] %vm92_vm0, %v79_v32  ;;  %v48_v45 = vmul.f32 %v113_v1, %v25_v29  ;;  %v68_v46 = vadd.f32 %v144_v2, %v45_v40  ;;  %v49_v47 = vmul.f32 %v113_v1, %v26_v34 }
   0xb   :  { %97 = vst.msk [vmem:[%s274_s3 + $0x20] sm:$0xff] %vm92_vm0, %v80_v37  ;;  %98 = vst.msk [vmem:[%s274_s3 + $0x28] sm:$0xff] %vm92_vm0, %v81_v38  ;;  %v50_v48 = vmul.f32 %v113_v1, %v27_v35  ;;  %v51_v49 = vmul.f32 %v113_v1, %v28_v36  ;;  %v69_v50 = vadd.f32 %v144_v2, %v46_v43 }
   0xc   :  { %99 = vst.msk [vmem:[%s274_s3 + $0x30] sm:$0xff] %vm92_vm0, %v82_v39  ;;  %100 = vst.msk [vmem:[%s274_s3 + $0x38] sm:$0xff] %vm92_vm0, %v83_v42  ;;  %v70_v51 = vadd.f32 %v144_v2, %v47_v44  ;;  %v71_v52 = vadd.f32 %v144_v2, %v48_v45  ;;  %v52_v53 = vmul.f32 %v113_v1, %v29_v41  ;;  %v84_v54 = vmax.f32 %v68_v46, 0.0 }
   0xd   :  { %v72_v55 = vadd.f32 %v144_v2, %v49_v47  ;;  %v73_v56 = vadd.f32 %v144_v2, %v50_v48  ;;  %v74_v57 = vadd.f32 %v144_v2, %v51_v49  ;;  %v85_v58 = vmax.f32 %v69_v50, 0.0 }
   0xe   :  { %v86_v59 = vmax.f32 %v70_v51, 0.0  ;;  %v87_v60 = vmax.f32 %v71_v52, 0.0  ;;  %v75_v61 = vadd.f32 %v144_v2, %v52_v53  ;;  %101 = vst.msk [vmem:[%s274_s3 + $0x40] sm:$0xff] %vm92_vm0, %v84_v54 }
   0xf   :  { %v88_v62 = vmax.f32 %v72_v55, 0.0  ;;  %v89_v63 = vmax.f32 %v73_v56, 0.0  ;;  %v90_v0 = vmax.f32 %v74_v57, 0.0  ;;  %102 = vst.msk [vmem:[%s274_s3 + $0x48] sm:$0xff] %vm92_vm0, %v85_v58 }
  0x10   :  { %103 = vst.msk [vmem:[%s274_s3 + $0x50] sm:$0xff] %vm92_vm0, %v86_v59  ;;  %104 = vst.msk [vmem:[%s274_s3 + $0x58] sm:$0xff] %vm92_vm0, %v87_v60  ;;  %v91_v1 = vmax.f32 %v75_v61, 0.0 }
  0x11   :  { %105 = vst.msk [vmem:[%s274_s3 + $0x60] sm:$0xff] %vm92_vm0, %v88_v62  ;;  %106 = vst.msk [vmem:[%s274_s3 + $0x68] sm:$0xff] %vm92_vm0, %v89_v63 }
  0x12   :  { %107 = vst.msk [vmem:[%s274_s3 + $0x70] sm:$0xff] %vm92_vm0, %v90_v0  ;;  %108 = vst.msk [vmem:[%s274_s3 + $0x78] sm:$0xff] %vm92_vm0, %v91_v1 }

// kernel: _lambda_.5
= control target key start
LH: loop header
LB: loop body
LE: loop exit
PB: predicated region body
PF: predicated region fallthrough
CT: control target
= control target key end

     0   :  { %vm97_vm0 = vcmask 1043456   ;;  %vm48_vm1 = vcmask 31744   ;;  %vm493_vm2 = vcmask 64512   ;;  %vm29_vm3 = vcmask 123904   ;;  %s1624_s2 = inlined_call_operand.vmem [shape: f32[4,8], index: 2, kind: input, shape index: {}]   ;;  %s1625_s0 = inlined_call_operand.vmem [shape: f32[128,4], index: 0, kind: input, shape index: {}, may-alias: {0,1}]   ;;  %s1626_s3 = inlined_call_operand.vmem [shape: f32[4,8], index: 3, kind: input, shape index: {}]   ;;  %s1627_s1 = inlined_call_operand.vmem [shape: f32[128,4], index: 1, kind: input, shape index: {}, may-alias: {0,1}]   ;;  %s1628_s5 = inlined_call_operand.vmem [shape: f32[8,16], index: 5, kind: input, shape index: {}]   ;;  %s1629_s4 = inlined_call_operand.vmem [shape: f32[8,16], index: 4, kind: input, shape index: {}]   ;;  %s1630_s7 = inlined_call_operand.vmem [shape: f32[2,16], index: 7, kind: output, shape index: {1}]   ;;  %s1631_s6 = inlined_call_operand.vmem [shape: f32[128,16], index: 6, kind: output, shape index: {0}]  }
   0x1   :  { %v47_v0 = vld [vmem:[%s1624_s2] sm:$0xf]  ;;  %v32_v2 = vld [vmem:[%s1625_s0 + $0x8] sm:$0xff]  ;;  %v33_v4 = vld [vmem:[%s1625_s0 + $0x10] sm:$0xff]  ;;  %vm880_vm4 = vcmask 130048   ;;  %vm988_vm5 = vcmask 1040384  }
   0x2   :  { %v31_v1 = vld [vmem:[%s1625_s0] sm:$0xff]  ;;  %1135 = vmatprep.subr.msk.mxu1 %vm97_vm0, %v47_v0  ;;  %v34_v5 = vld [vmem:[%s1625_s0 + $0x18] sm:$0xff]  ;;  %v36_v7 = vld [vmem:[%s1625_s0 + $0x28] sm:$0xff] }
   0x3   :  { %1137 = vmatprep.mubr.msk.f32.mxu1 %vm48_vm1, %v31_v1  ;;  %v278_v3 = vld [vmem:[%s1626_s3] sm:$0xf]  ;;  %1136 = vmatpush3.msk.msra.mxu1 %vm97_vm0, %v47_v0  ;;  %v37_v8 = vld [vmem:[%s1625_s0 + $0x30] sm:$0xff]  ;;  %v38_v9 = vld [vmem:[%s1625_s0 + $0x38] sm:$0xff] }
   0x4   :  { %1138 = vmatmul.mubr.msk.f32.vlgmr.msra.gmra.mrb[0].mxu1 %vm48_vm1, %v32_v2  ;;  %1161 = vmatprep.subr.msk.mxu1 %vm97_vm0, %v278_v3  ;;  %v35_v6 = vld [vmem:[%s1625_s0 + $0x20] sm:$0xff]  ;;  %v40_v11 = vld [vmem:[%s1625_s0 + $0x48] sm:$0xff]  ;;  %v41_v12 = vld [vmem:[%s1625_s0 + $0x50] sm:$0xff] }
   0x5   :  { %1162 = vmatpush3.msk.msra.mxu1 %vm97_vm0, %v278_v3  ;;  %1140 = vmatprep.mubr.msk.f32.mxu1 %vm48_vm1, %v33_v4  ;;  %v39_v10 = vld [vmem:[%s1625_s0 + $0x40] sm:$0xff]  ;;  %v42_v13 = vld [vmem:[%s1625_s0 + $0x58] sm:$0xff]  ;;  %v44_v15 = vld [vmem:[%s1625_s0 + $0x68] sm:$0xff] }
   0x6   :  { %v43_v14 = vld [vmem:[%s1625_s0 + $0x60] sm:$0xff]  ;;  %v45_v16 = vld [vmem:[%s1625_s0 + $0x70] sm:$0xff]  ;;  %v46_v17 = vld [vmem:[%s1625_s0 + $0x78] sm:$0xff] }
   0x7   :  { %v262_v18 = vld [vmem:[%s1627_s1] sm:$0xff]  ;;  %v263_v19 = vld [vmem:[%s1627_s1 + $0x8] sm:$0xff]  ;;  %v264_v20 = vld [vmem:[%s1627_s1 + $0x10] sm:$0xff] }
   0x8   :  { %1141 = vmatmul.mubr.msk.f32.gmra.mrb[2].mxu1 %vm48_vm1, %v34_v5  ;;  %v265_v21 = vld [vmem:[%s1627_s1 + $0x18] sm:$0xff]  ;;  %v266_v22 = vld [vmem:[%s1627_s1 + $0x20] sm:$0xff]  ;;  %v267_v23 = vld [vmem:[%s1627_s1 + $0x28] sm:$0xff] }
   0x9   :  { %1143 = vmatprep.mubr.msk.f32.mxu1 %vm48_vm1, %v35_v6  ;;  %v268_v24 = vld [vmem:[%s1627_s1 + $0x30] sm:$0xff]  ;;  %v269_v25 = vld [vmem:[%s1627_s1 + $0x38] sm:$0xff]  ;;  %v270_v26 = vld [vmem:[%s1627_s1 + $0x40] sm:$0xff] }
   0xa   :  { %v271_v27 = vld [vmem:[%s1627_s1 + $0x48] sm:$0xff]  ;;  %v272_v28 = vld [vmem:[%s1627_s1 + $0x50] sm:$0xff]  ;;  %v273_v29 = vld [vmem:[%s1627_s1 + $0x58] sm:$0xff] }
   0xb   :  { %v274_v30 = vld [vmem:[%s1627_s1 + $0x60] sm:$0xff]  ;;  %v275_v31 = vld [vmem:[%s1627_s1 + $0x68] sm:$0xff]  ;;  %v276_v32 = vld [vmem:[%s1627_s1 + $0x70] sm:$0xff] }
   0xc   :  { %1144 = vmatmul.mubr.msk.f32.gmra.mrb[4].mxu1 %vm48_vm1, %v36_v7  ;;  %v277_v33 = vld [vmem:[%s1627_s1 + $0x78] sm:$0xff]  ;;  %v492_v34 = vld [vmem:[%s1628_s5] sm:$0xff] }
   0xd   :  { %1146 = vmatprep.mubr.msk.f32.mxu1 %vm48_vm1, %v37_v8  ;;  %1187 = vmatprep.subr.mxu0 %v492_v34  ;;  %v491_v35 = vld [vmem:[%s1629_s4] sm:$0xff] }
   0xe   :  { %1188 = vmatpush3.msra.mxu0 %v492_v34 }
   0xf   :  { %1213 = vmatprep.subr.mxu0 %v491_v35 }
  0x10   :  { %1147 = vmatmul.mubr.msk.f32.gmra.mrb[6].mxu1 %vm48_vm1, %v38_v9 }
  0x11   :  { %1149 = vmatprep.mubr.msk.f32.mxu1 %vm48_vm1, %v39_v10 }
  0x14   :  { %1150 = vmatmul.mubr.msk.f32.gmra.mrb[8].mxu1 %vm48_vm1, %v40_v11 }
  0x15   :  { %1152 = vmatprep.mubr.msk.f32.mxu1 %vm48_vm1, %v41_v12 }
  0x18   :  { %1153 = vmatmul.mubr.msk.f32.gmra.mrb[10].mxu1 %vm48_vm1, %v42_v13 }
  0x19   :  { %1155 = vmatprep.mubr.msk.f32.mxu1 %vm48_vm1, %v43_v14 }
  0x1c   :  { %1156 = vmatmul.mubr.msk.f32.gmra.mrb[12].mxu1 %vm48_vm1, %v44_v15 }
  0x1d   :  { %1158 = vmatprep.mubr.msk.f32.mxu1 %vm48_vm1, %v45_v16 }
  0x20   :  { %1159 = vmatmul.mubr.msk.f32.gmra.mrb[14].mxu1 %vm48_vm1, %v46_v17 }
  0x21   :  { %1163 = vmatprep.mubr.msk.f32.mxu1 %vm48_vm1, %v262_v18 }
  0x24   :  { %1164 = vmatmul.mubr.msk.f32.vlgmr.msra.gmra.mrb[16].mxu1 %vm48_vm1, %v263_v19 }
  0x25   :  { %1166 = vmatprep.mubr.msk.f32.mxu1 %vm48_vm1, %v264_v20 }
  0x28   :  { %1167 = vmatmul.mubr.msk.f32.gmra.mrb[18].mxu1 %vm48_vm1, %v265_v21 }
  0x29   :  { %1169 = vmatprep.mubr.msk.f32.mxu1 %vm48_vm1, %v266_v22 }
  0x2c   :  { %1170 = vmatmul.mubr.msk.f32.gmra.mrb[20].mxu1 %vm48_vm1, %v267_v23 }
  0x2d   :  { %1172 = vmatprep.mubr.msk.f32.mxu1 %vm48_vm1, %v268_v24 }
  0x30   :  { %1173 = vmatmul.mubr.msk.f32.gmra.mrb[22].mxu1 %vm48_vm1, %v269_v25 }
  0x31   :  { %1175 = vmatprep.mubr.msk.f32.mxu1 %vm48_vm1, %v270_v26 }
  0x34   :  { %1176 = vmatmul.mubr.msk.f32.gmra.mrb[24].mxu1 %vm48_vm1, %v271_v27 }
  0x35   :  { %1178 = vmatprep.mubr.msk.f32.mxu1 %vm48_vm1, %v272_v28 }
  0x38   :  { %1179 = vmatmul.mubr.msk.f32.gmra.mrb[26].mxu1 %vm48_vm1, %v273_v29 }
  0x39   :  { %1181 = vmatprep.mubr.msk.f32.mxu1 %vm48_vm1, %v274_v30 }
  0x3c   :  { %1182 = vmatmul.mubr.msk.f32.gmra.mrb[28].mxu1 %vm48_vm1, %v275_v31 }
  0x3d   :  { %1184 = vmatprep.mubr.msk.f32.mxu1 %vm48_vm1, %v276_v32 }
  0x40   :  { %1185 = vmatmul.mubr.msk.f32.gmra.mrb[30].mxu1 %vm48_vm1, %v277_v33 }
  0xd7   :  { %v1437_v36 = vpop.f32.mrb[0].mxu1 }
  0xd8   :  { %v1439_v37 = vpop.f32.mrb[1].mxu1  ;;  %v247_v21 = vmax.f32 %v1437_v36, 0.0  ;;  %v1256_v36 = vmov 0.0  }
  0xd9   :  { %v246_v20 = vmax.f32 %v1439_v37, 0.0  ;;  %30 = vst.msk [vmem:[%s1630_s7] sm:$0x3] %vm29_vm3, %v1256_v36 }
  0xdb   :  { %v1441_v38 = vpop.f32.mrb[2].mxu1 }
  0xdc   :  { %v1443_v39 = vpop.f32.mrb[3].mxu1  ;;  %v249_v23 = vmax.f32 %v1441_v38, 0.0 }
  0xdd   :  { %v248_v22 = vmax.f32 %v1443_v39, 0.0 }
  0xdf   :  { %v1445_v40 = vpop.f32.mrb[4].mxu1 }
  0xe0   :  { %v1447_v41 = vpop.f32.mrb[5].mxu1  ;;  %v251_v25 = vmax.f32 %v1445_v40, 0.0 }
  0xe1   :  { %v250_v24 = vmax.f32 %v1447_v41, 0.0 }
  0xe3   :  { %v1449_v42 = vpop.f32.mrb[6].mxu1 }
  0xe4   :  { %v1451_v43 = vpop.f32.mrb[7].mxu1  ;;  %v253_v27 = vmax.f32 %v1449_v42, 0.0 }
  0xe5   :  { %v252_v26 = vmax.f32 %v1451_v43, 0.0 }
  0xe7   :  { %v1453_v44 = vpop.f32.mrb[8].mxu1 }
  0xe8   :  { %v1455_v45 = vpop.f32.mrb[9].mxu1  ;;  %v255_v29 = vmax.f32 %v1453_v44, 0.0 }
  0xe9   :  { %v254_v28 = vmax.f32 %v1455_v45, 0.0 }
  0xeb   :  { %v1457_v46 = vpop.f32.mrb[10].mxu1 }
  0xec   :  { %v1459_v47 = vpop.f32.mrb[11].mxu1  ;;  %v257_v31 = vmax.f32 %v1457_v46, 0.0 }
  0xed   :  { %v256_v30 = vmax.f32 %v1459_v47, 0.0 }
  0xef   :  { %v1461_v48 = vpop.f32.mrb[12].mxu1 }
  0xf0   :  { %v1463_v49 = vpop.f32.mrb[13].mxu1  ;;  %v259_v33 = vmax.f32 %v1461_v48, 0.0 }
  0xf1   :  { %v258_v32 = vmax.f32 %v1463_v49, 0.0 }
  0xf3   :  { %v1465_v50 = vpop.f32.mrb[14].mxu1 }
  0xf4   :  { %v1467_v51 = vpop.f32.mrb[15].mxu1 }
  0xf5   :  { %v260_v34 = vmax.f32 %v1467_v51, 0.0 }
  0xf7   :  { %v1165_v52 = vpop.f32.mrb[16].mxu1 }
  0xf8   :  { %v396_v53 = vpop.f32.mrb[17].mxu1  ;;  %v476_v55 = vmax.f32 %v1165_v52, 0.0 }
  0xf9   :  { %v475_v54 = vmax.f32 %v396_v53, 0.0 }
  0xfb   :  { %v1168_v56 = vpop.f32.mrb[18].mxu1  ;;  %1189 = vmatprep.mubr.msk.f32.mxu0 %vm493_vm2, %v475_v54 }
  0xfc   :  { %v406_v57 = vpop.f32.mrb[19].mxu1  ;;  %1190 = vmatmul.mubr.msk.f32.vlgmr.msra.gmra.mrb[0].mxu0 %vm493_vm2, %v476_v55  ;;  %v478_v59 = vmax.f32 %v1168_v56, 0.0 }
  0xfd   :  { %v477_v58 = vmax.f32 %v406_v57, 0.0  ;;  %1214 = vmatpush3.msra.mxu0 %v491_v35  ;;  %v261_v35 = vmax.f32 %v1465_v50, 0.0 }
  0xff   :  { %v1171_v60 = vpop.f32.mrb[20].mxu1  ;;  %1192 = vmatprep.mubr.msk.f32.mxu0 %vm493_vm2, %v477_v58 }
 0x100   :  { %v416_v61 = vpop.f32.mrb[21].mxu1  ;;  %1193 = vmatmul.mubr.msk.f32.gmra.mrb[2].mxu0 %vm493_vm2, %v478_v59  ;;  %v480_v63 = vmax.f32 %v1171_v60, 0.0 }
 0x101   :  { %v479_v62 = vmax.f32 %v416_v61, 0.0 }
 0x103   :  { %v1174_v0 = vpop.f32.mrb[22].mxu1  ;;  %1195 = vmatprep.mubr.msk.f32.mxu0 %vm493_vm2, %v479_v62 }
 0x104   :  { %v426_v1 = vpop.f32.mrb[23].mxu1  ;;  %1196 = vmatmul.mubr.msk.f32.gmra.mrb[4].mxu0 %vm493_vm2, %v480_v63  ;;  %v482_v3 = vmax.f32 %v1174_v0, 0.0 }
 0x105   :  { %v481_v2 = vmax.f32 %v426_v1, 0.0 }
 0x107   :  { %v1177_v4 = vpop.f32.mrb[24].mxu1  ;;  %1198 = vmatprep.mubr.msk.f32.mxu0 %vm493_vm2, %v481_v2 }
 0x108   :  { %v436_v5 = vpop.f32.mrb[25].mxu1  ;;  %1199 = vmatmul.mubr.msk.f32.gmra.mrb[6].mxu0 %vm493_vm2, %v482_v3  ;;  %v484_v7 = vmax.f32 %v1177_v4, 0.0 }
 0x109   :  { %v483_v6 = vmax.f32 %v436_v5, 0.0 }
 0x10b   :  { %v1180_v8 = vpop.f32.mrb[26].mxu1  ;;  %1201 = vmatprep.mubr.msk.f32.mxu0 %vm493_vm2, %v483_v6 }
 0x10c   :  { %v446_v9 = vpop.f32.mrb[27].mxu1  ;;  %1202 = vmatmul.mubr.msk.f32.gmra.mrb[8].mxu0 %vm493_vm2, %v484_v7  ;;  %v486_v11 = vmax.f32 %v1180_v8, 0.0 }
 0x10d   :  { %v485_v10 = vmax.f32 %v446_v9, 0.0 }
 0x10f   :  { %v1183_v12 = vpop.f32.mrb[28].mxu1  ;;  %1204 = vmatprep.mubr.msk.f32.mxu0 %vm493_vm2, %v485_v10 }
 0x110   :  { %v456_v13 = vpop.f32.mrb[29].mxu1  ;;  %1205 = vmatmul.mubr.msk.f32.gmra.mrb[10].mxu0 %vm493_vm2, %v486_v11  ;;  %v488_v15 = vmax.f32 %v1183_v12, 0.0 }
 0x111   :  { %v487_v14 = vmax.f32 %v456_v13, 0.0 }
 0x113   :  { %v1186_v16 = vpop.f32.mrb[30].mxu1  ;;  %1207 = vmatprep.mubr.msk.f32.mxu0 %vm493_vm2, %v487_v14 }
 0x114   :  { %v466_v17 = vpop.f32.mrb[31].mxu1  ;;  %1208 = vmatmul.mubr.msk.f32.gmra.mrb[12].mxu0 %vm493_vm2, %v488_v15  ;;  %v490_v19 = vmax.f32 %v1186_v16, 0.0 }
 0x115   :  { %v489_v18 = vmax.f32 %v466_v17, 0.0 }
 0x117   :  { %1210 = vmatprep.mubr.msk.f32.mxu0 %vm493_vm2, %v489_v18 }
 0x118   :  { %1211 = vmatmul.mubr.msk.f32.gmra.mrb[14].mxu0 %vm493_vm2, %v490_v19 }
 0x119   :  { %1215 = vmatprep.mubr.msk.f32.mxu0 %vm493_vm2, %v246_v20 }
 0x11c   :  { %1216 = vmatmul.mubr.msk.f32.vlgmr.msra.gmra.mrb[0].mxu0 %vm493_vm2, %v247_v21 }
 0x11d   :  { %1218 = vmatprep.mubr.msk.f32.mxu0 %vm493_vm2, %v248_v22 }
 0x120   :  { %1219 = vmatmul.mubr.msk.f32.gmra.mrb[2].mxu0 %vm493_vm2, %v249_v23 }
 0x121   :  { %1221 = vmatprep.mubr.msk.f32.mxu0 %vm493_vm2, %v250_v24 }
 0x124   :  { %1222 = vmatmul.mubr.msk.f32.gmra.mrb[4].mxu0 %vm493_vm2, %v251_v25 }
 0x125   :  { %1224 = vmatprep.mubr.msk.f32.mxu0 %vm493_vm2, %v252_v26 }
 0x128   :  { %1225 = vmatmul.mubr.msk.f32.gmra.mrb[6].mxu0 %vm493_vm2, %v253_v27 }
 0x129   :  { %1227 = vmatprep.mubr.msk.f32.mxu0 %vm493_vm2, %v254_v28 }
 0x12c   :  { %1228 = vmatmul.mubr.msk.f32.gmra.mrb[8].mxu0 %vm493_vm2, %v255_v29 }
 0x12d   :  { %1230 = vmatprep.mubr.msk.f32.mxu0 %vm493_vm2, %v256_v30 }
 0x130   :  { %1231 = vmatmul.mubr.msk.f32.gmra.mrb[10].mxu0 %vm493_vm2, %v257_v31 }
 0x131   :  { %1233 = vmatprep.mubr.msk.f32.mxu0 %vm493_vm2, %v258_v32 }
 0x134   :  { %1234 = vmatmul.mubr.msk.f32.gmra.mrb[12].mxu0 %vm493_vm2, %v259_v33 }
 0x135   :  { %1236 = vmatprep.mubr.msk.f32.mxu0 %vm493_vm2, %v260_v34 }
 0x138   :  { %1237 = vmatmul.mubr.msk.f32.gmra.mrb[14].mxu0 %vm493_vm2, %v261_v35 }
 0x1ef   :  { %v1217_v37 = vpop.f32.mrb[0].mxu0 }
 0x1f0   :  { %882 = vst.msk [vmem:[%s1631_s6 + $0x8] sm:$0xff] %vm880_vm4, %v1217_v37  ;;  %v898_v38 = vsel %vm880_vm4, %v1217_v37, 0.0  ;;  %v935_v39 = vmul.f32 %v1217_v37, %v1217_v37  ;;  %v801_v40 = vpop.f32.mrb[1].mxu0 }
 0x1f1   :  { %881 = vst.msk [vmem:[%s1631_s6] sm:$0xff] %vm880_vm4, %v801_v40  ;;  %v897_v41 = vsel %vm880_vm4, %v801_v40, 0.0  ;;  %v934_v42 = vmul.f32 %v801_v40, %v801_v40 }
 0x1f2   :  { %v951_v43 = vsel %vm880_vm4, %v935_v39, 0.0  ;;  %v899_v44 = vadd.f32 %v898_v38, %v897_v41 }
 0x1f3   :  { %v950_v45 = vsel %vm880_vm4, %v934_v42, 0.0  ;;  %v1220_v46 = vpop.f32.mrb[2].mxu0 }
 0x1f4   :  { %v952_v47 = vadd.f32 %v951_v43, %v950_v45  ;;  %884 = vst.msk [vmem:[%s1631_s6 + $0x18] sm:$0xff] %vm880_vm4, %v1220_v46  ;;  %v811_v48 = vpop.f32.mrb[3].mxu0  ;;  %v937_v49 = vmul.f32 %v1220_v46, %v1220_v46  ;;  %v902_v53 = vsel %vm880_vm4, %v1220_v46, 0.0 }
 0x1f5   :  { %883 = vst.msk [vmem:[%s1631_s6 + $0x10] sm:$0xff] %vm880_vm4, %v811_v48  ;;  %v900_v50 = vsel %vm880_vm4, %v811_v48, 0.0  ;;  %v936_v51 = vmul.f32 %v811_v48, %v811_v48 }
 0x1f6   :  { %v901_v52 = vadd.f32 %v900_v50, %v899_v44  ;;  %v955_v59 = vsel %vm880_vm4, %v937_v49, 0.0 }
 0x1f7   :  { %v953_v54 = vsel %vm880_vm4, %v936_v51, 0.0  ;;  %v1223_v55 = vpop.f32.mrb[4].mxu0 }
 0x1f8   :  { %v954_v56 = vadd.f32 %v953_v54, %v952_v47  ;;  %886 = vst.msk [vmem:[%s1631_s6 + $0x28] sm:$0xff] %vm880_vm4, %v1223_v55  ;;  %v821_v57 = vpop.f32.mrb[5].mxu0  ;;  %v903_v58 = vadd.f32 %v902_v53, %v901_v52  ;;  %v939_v60 = vmul.f32 %v1223_v55, %v1223_v55  ;;  %v906_v1 = vsel %vm880_vm4, %v1223_v55, 0.0 }
 0x1f9   :  { %885 = vst.msk [vmem:[%s1631_s6 + $0x20] sm:$0xff] %vm880_vm4, %v821_v57  ;;  %v904_v61 = vsel %vm880_vm4, %v821_v57, 0.0  ;;  %v938_v62 = vmul.f32 %v821_v57, %v821_v57 }
 0x1fa   :  { %v905_v63 = vadd.f32 %v904_v61, %v903_v58  ;;  %v956_v0 = vadd.f32 %v955_v59, %v954_v56  ;;  %v959_v7 = vsel %vm880_vm4, %v939_v60, 0.0 }
 0x1fb   :  { %v957_v2 = vsel %vm880_vm4, %v938_v62, 0.0  ;;  %v1226_v3 = vpop.f32.mrb[6].mxu0 }
 0x1fc   :  { %v958_v4 = vadd.f32 %v957_v2, %v956_v0  ;;  %888 = vst.msk [vmem:[%s1631_s6 + $0x38] sm:$0xff] %vm880_vm4, %v1226_v3  ;;  %v831_v5 = vpop.f32.mrb[7].mxu0  ;;  %v907_v6 = vadd.f32 %v906_v1, %v905_v63  ;;  %v941_v8 = vmul.f32 %v1226_v3, %v1226_v3  ;;  %v910_v13 = vsel %vm880_vm4, %v1226_v3, 0.0 }
 0x1fd   :  { %887 = vst.msk [vmem:[%s1631_s6 + $0x30] sm:$0xff] %vm880_vm4, %v831_v5  ;;  %v908_v9 = vsel %vm880_vm4, %v831_v5, 0.0  ;;  %v940_v10 = vmul.f32 %v831_v5, %v831_v5 }
 0x1fe   :  { %v909_v11 = vadd.f32 %v908_v9, %v907_v6  ;;  %v960_v12 = vadd.f32 %v959_v7, %v958_v4  ;;  %v963_v19 = vsel %vm880_vm4, %v941_v8, 0.0 }
 0x1ff   :  { %v961_v14 = vsel %vm880_vm4, %v940_v10, 0.0  ;;  %v1229_v15 = vpop.f32.mrb[8].mxu0 }
 0x200   :  { %v962_v16 = vadd.f32 %v961_v14, %v960_v12  ;;  %890 = vst.msk [vmem:[%s1631_s6 + $0x48] sm:$0xff] %vm880_vm4, %v1229_v15  ;;  %v841_v17 = vpop.f32.mrb[9].mxu0  ;;  %v911_v18 = vadd.f32 %v910_v13, %v909_v11  ;;  %v943_v20 = vmul.f32 %v1229_v15, %v1229_v15  ;;  %v914_v25 = vsel %vm880_vm4, %v1229_v15, 0.0  ;;  %v987_v15 = vld [vmem:[%s1630_s7] sm:$0x3] }
 0x201   :  { %889 = vst.msk [vmem:[%s1631_s6 + $0x40] sm:$0xff] %vm880_vm4, %v841_v17  ;;  %v912_v21 = vsel %vm880_vm4, %v841_v17, 0.0  ;;  %v942_v22 = vmul.f32 %v841_v17, %v841_v17 }
 0x202   :  { %v913_v23 = vadd.f32 %v912_v21, %v911_v18  ;;  %v964_v24 = vadd.f32 %v963_v19, %v962_v16  ;;  %v967_v31 = vsel %vm880_vm4, %v943_v20, 0.0 }
 0x203   :  { %v965_v26 = vsel %vm880_vm4, %v942_v22, 0.0  ;;  %v1232_v27 = vpop.f32.mrb[10].mxu0 }
 0x204   :  { %v966_v28 = vadd.f32 %v965_v26, %v964_v24  ;;  %892 = vst.msk [vmem:[%s1631_s6 + $0x58] sm:$0xff] %vm880_vm4, %v1232_v27  ;;  %v851_v29 = vpop.f32.mrb[11].mxu0  ;;  %v915_v30 = vadd.f32 %v914_v25, %v913_v23  ;;  %v945_v32 = vmul.f32 %v1232_v27, %v1232_v27  ;;  %v918_v37 = vsel %vm880_vm4, %v1232_v27, 0.0 }
 0x205   :  { %891 = vst.msk [vmem:[%s1631_s6 + $0x50] sm:$0xff] %vm880_vm4, %v851_v29  ;;  %v916_v33 = vsel %vm880_vm4, %v851_v29, 0.0  ;;  %v944_v34 = vmul.f32 %v851_v29, %v851_v29 }
 0x206   :  { %v917_v35 = vadd.f32 %v916_v33, %v915_v30  ;;  %v968_v36 = vadd.f32 %v967_v31, %v966_v28  ;;  %v971_v43 = vsel %vm880_vm4, %v945_v32, 0.0 }
 0x207   :  { %v969_v38 = vsel %vm880_vm4, %v944_v34, 0.0  ;;  %v1235_v39 = vpop.f32.mrb[12].mxu0 }
 0x208   :  { %v970_v40 = vadd.f32 %v969_v38, %v968_v36  ;;  %894 = vst.msk [vmem:[%s1631_s6 + $0x68] sm:$0xff] %vm880_vm4, %v1235_v39  ;;  %v861_v41 = vpop.f32.mrb[13].mxu0  ;;  %v919_v42 = vadd.f32 %v918_v37, %v917_v35  ;;  %v947_v44 = vmul.f32 %v1235_v39, %v1235_v39  ;;  %v922_v49 = vsel %vm880_vm4, %v1235_v39, 0.0 }
 0x209   :  { %893 = vst.msk [vmem:[%s1631_s6 + $0x60] sm:$0xff] %vm880_vm4, %v861_v41  ;;  %v920_v45 = vsel %vm880_vm4, %v861_v41, 0.0  ;;  %v946_v46 = vmul.f32 %v861_v41, %v861_v41 }
 0x20a   :  { %v921_v47 = vadd.f32 %v920_v45, %v919_v42  ;;  %v972_v48 = vadd.f32 %v971_v43, %v970_v40  ;;  %v975_v55 = vsel %vm880_vm4, %v947_v44, 0.0 }
 0x20b   :  { %v973_v50 = vsel %vm880_vm4, %v946_v46, 0.0  ;;  %v1238_v51 = vpop.f32.mrb[14].mxu0 }
 0x20c   :  { %v974_v52 = vadd.f32 %v973_v50, %v972_v48  ;;  %896 = vst.msk [vmem:[%s1631_s6 + $0x78] sm:$0xff] %vm880_vm4, %v1238_v51  ;;  %v871_v53 = vpop.f32.mrb[15].mxu0  ;;  %v923_v54 = vadd.f32 %v922_v49, %v921_v47  ;;  %v949_v56 = vmul.f32 %v1238_v51, %v1238_v51  ;;  %v926_v61 = vsel %vm880_vm4, %v1238_v51, 0.0 }
 0x20d   :  { %895 = vst.msk [vmem:[%s1631_s6 + $0x70] sm:$0xff] %vm880_vm4, %v871_v53  ;;  %v924_v57 = vsel %vm880_vm4, %v871_v53, 0.0  ;;  %v948_v58 = vmul.f32 %v871_v53, %v871_v53 }
 0x20e   :  { %v925_v59 = vadd.f32 %v924_v57, %v923_v54  ;;  %v976_v60 = vadd.f32 %v975_v55, %v974_v52  ;;  %v979_v1 = vsel %vm880_vm4, %v949_v56, 0.0 }
 0x20f   :  { %v977_v62 = vsel %vm880_vm4, %v948_v58, 0.0 }
 0x210   :  { %v927_v63 = vadd.f32 %v926_v61, %v925_v59  ;;  %v978_v0 = vadd.f32 %v977_v62, %v976_v60 }
 0x212   :  { %v928_v2 = vrot.slane %v927_v63, 4  ;;  %v980_v3 = vadd.f32 %v979_v1, %v978_v0 }
 0x214   :  { %v929_v4 = vadd.f32 %v928_v2, %v927_v63  ;;  %v981_v5 = vrot.slane %v980_v3, 4 }
 0x216   :  { %v930_v6 = vrot.slane %v929_v4, 2  ;;  %v982_v7 = vadd.f32 %v981_v5, %v980_v3 }
 0x218   :  { %v931_v8 = vadd.f32 %v930_v6, %v929_v4  ;;  %v983_v9 = vrot.slane %v982_v7, 2 }
 0x21a   :  { %v932_v10 = vrot.slane %v931_v8, 1  ;;  %v984_v11 = vadd.f32 %v983_v9, %v982_v7 }
 0x21c   :  { %v985_v12 = vrot.slane %v984_v11, 1  ;;  %v933_v13 = vadd.f32 %v932_v10, %v931_v8 }
 0x21e   :  { %v986_v14 = vadd.f32 %v985_v12, %v984_v11 }
 0x220   :  { %v989_v16 = vsel %vm988_vm5, %v933_v13, %v986_v14 }
 0x221   :  { %v990_v17 = vadd.f32 %v989_v16, %v987_v15 }
 0x223   :  { %992 = vst.msk [vmem:[%s1630_s7] sm:$0x3] %vm29_vm3, %v990_v17 }

// kernel: _lambda_.7
= control target key start
LH: loop header
LB: loop body
LE: loop exit
PB: predicated region body
PF: predicated region fallthrough
CT: control target
= control target key end

     0   :  { %vm36_vm0 = vcmask 64512   ;;  %vm248_vm1 = vcmask 130048   ;;  %vm29_vm2 = vcmask 254976   ;;  %v579_v32 = vmov 0.0   ;;  %s713_s2 = inlined_call_operand.vmem [shape: f32[8,16], index: 2, kind: input, shape index: {}]   ;;  %s714_s3 = inlined_call_operand.vmem [shape: f32[8,16], index: 3, kind: input, shape index: {}]   ;;  %s715_s0 = inlined_call_operand.vmem [shape: f32[32,8], index: 0, kind: input, shape index: {}]   ;;  %s716_s1 = inlined_call_operand.vmem [shape: f32[32,8], index: 1, kind: input, shape index: {}]   ;;  %s717_s5 = inlined_call_operand.vmem [shape: f32[16,32], index: 5, kind: input, shape index: {}]   ;;  %s718_s4 = inlined_call_operand.vmem [shape: f32[16,32], index: 4, kind: input, shape index: {}]   ;;  %s719_s7 = inlined_call_operand.vmem [shape: f32[2,32], index: 7, kind: output, shape index: {1}]   ;;  %s720_s6 = inlined_call_operand.vmem [shape: f32[32,32], index: 6, kind: output, shape index: {0}]  }
   0x1   :  { %v35_v0 = vld [vmem:[%s713_s2] sm:$0xff]  ;;  %v32_v4 = vld [vmem:[%s715_s0 + $0x8] sm:$0xff]  ;;  %v33_v6 = vld [vmem:[%s715_s0 + $0x10] sm:$0xff]  ;;  %30 = vst.msk [vmem:[%s719_s7] sm:$0x3] %vm29_vm2, %v579_v32  ;;  %vm443_vm3 = vcmask 261120  }
   0x2   :  { %v142_v1 = vld [vmem:[%s714_s3] sm:$0xff]  ;;  %530 = vmatprep.subr.mxu0 %v35_v0  ;;  %v139_v5 = vld [vmem:[%s716_s1 + $0x8] sm:$0xff]  ;;  %v140_v7 = vld [vmem:[%s716_s1 + $0x10] sm:$0xff]  ;;  %vm479_vm4 = vcmask 1040384  }
   0x3   :  { %v31_v2 = vld [vmem:[%s715_s0] sm:$0xff]  ;;  %538 = vmatprep.subr.mxu1 %v142_v1  ;;  %531 = vmatpush3.msra.mxu0 %v35_v0  ;;  %v247_v9 = vld [vmem:[%s717_s5 + $0x8] sm:$0xff]  ;;  %v34_v13 = vld [vmem:[%s715_s0 + $0x18] sm:$0xff] }
   0x4   :  { %v138_v3 = vld [vmem:[%s716_s1] sm:$0xff]  ;;  %532 = vmatprep.mubr.msk.f32.mxu0 %vm36_vm0, %v31_v2  ;;  %539 = vmatpush3.msra.mxu1 %v142_v1  ;;  %v245_v12 = vld [vmem:[%s718_s4 + $0x8] sm:$0xff]  ;;  %v141_v14 = vld [vmem:[%s716_s1 + $0x18] sm:$0xff] }
   0x5   :  { %540 = vmatprep.mubr.msk.f32.mxu1 %vm36_vm0, %v138_v3  ;;  %v246_v8 = vld [vmem:[%s717_s5] sm:$0xff]  ;;  %533 = vmatmul.mubr.msk.f32.vlgmr.msra.gmra.mrb[0].mxu0 %vm36_vm0, %v32_v4 }
   0x6   :  { %541 = vmatmul.mubr.msk.f32.vlgmr.msra.gmra.mrb[0].mxu1 %vm36_vm0, %v139_v5  ;;  %v566_v10 = vpack.c.bf16 %v247_v9, %v246_v8  ;;  %v244_v11 = vld [vmem:[%s718_s4] sm:$0xff]  ;;  %535 = vmatprep.mubr.msk.f32.mxu0 %vm36_vm0, %v33_v6 }
   0x7   :  { %543 = vmatprep.mubr.msk.f32.mxu1 %vm36_vm0, %v140_v7  ;;  %v570_v15 = vpack.c.bf16 %v245_v12, %v244_v11 }
   0x8   :  { %567 = vmatprep.subr.bf16.mxu1 %v566_v10  ;;  %v478_v11 = vld [vmem:[%s719_s7] sm:$0x3] }
   0x9   :  { %571 = vmatprep.subr.bf16.mxu0 %v570_v15  ;;  %569 = vmatpush3.bf16.msra.mxu1 %v566_v10 }
   0xa   :  { %536 = vmatmul.mubr.msk.f32.gmra.mrb[2].mxu0 %vm36_vm0, %v34_v13  ;;  %544 = vmatmul.mubr.msk.f32.gmra.mrb[2].mxu1 %vm36_vm0, %v141_v14 }
   0xb   :  { %573 = vmatpush3.bf16.msra.mxu0 %v570_v15 }
  0xd8   :  { %v534_v16 = vpop.f32.mrb[0].mxu0 }
  0xd9   :  { %v542_v17 = vpop.f32.mrb[0].mxu1  ;;  %v115_v18 = vpop.f32.mrb[1].mxu0  ;;  %v135_v22 = vmax.f32 %v534_v16, 0.0 }
  0xda   :  { %v221_v19 = vpop.f32.mrb[1].mxu1  ;;  %v134_v20 = vmax.f32 %v115_v18, 0.0  ;;  %v241_v23 = vmax.f32 %v542_v17, 0.0 }
  0xdb   :  { %v240_v21 = vmax.f32 %v221_v19, 0.0 }
  0xdc   :  { %560 = vmatprep.mubr.msk.f32.mxu0 %vm248_vm1, %v134_v20 }
  0xdd   :  { %v537_v24 = vpop.f32.mrb[2].mxu0  ;;  %v545_v25 = vpop.f32.mrb[2].mxu1  ;;  %550 = vmatprep.mubr.msk.f32.mxu1 %vm248_vm1, %v240_v21  ;;  %561 = vmatmul.mubr.msk.f32.vlgmr.msra.gmra.mrb[4].mxu0 %vm248_vm1, %v135_v22 }
  0xde   :  { %v125_v26 = vpop.f32.mrb[3].mxu0  ;;  %v231_v27 = vpop.f32.mrb[3].mxu1  ;;  %551 = vmatmul.mubr.msk.f32.vlgmr.msra.gmra.mrb[4].mxu1 %vm248_vm1, %v241_v23  ;;  %v137_v30 = vmax.f32 %v537_v24, 0.0  ;;  %v243_v31 = vmax.f32 %v545_v25, 0.0 }
  0xdf   :  { %v136_v28 = vmax.f32 %v125_v26, 0.0  ;;  %v242_v29 = vmax.f32 %v231_v27, 0.0 }
  0xe1   :  { %553 = vmatprep.mubr.msk.f32.mxu1 %vm248_vm1, %v242_v29  ;;  %563 = vmatprep.mubr.msk.f32.mxu0 %vm248_vm1, %v136_v28 }
  0xe2   :  { %554 = vmatmul.mubr.msk.f32.gmra.mrb[6].mxu1 %vm248_vm1, %v243_v31  ;;  %564 = vmatmul.mubr.msk.f32.gmra.mrb[6].mxu0 %vm248_vm1, %v137_v30 }
 0x1b0   :  { %v562_v34 = vpop.f32.mrb[4].mxu0 }
 0x1b1   :  { %v552_v33 = vpop.f32.mrb[4].mxu1  ;;  %v424_v37 = vpop.f32.mrb[5].mxu0 }
 0x1b2   :  { %v430_v35 = vadd.f32 %v562_v34, %v552_v33  ;;  %v327_v36 = vpop.f32.mrb[5].mxu1 }
 0x1b3   :  { %v425_v38 = vadd.f32 %v424_v37, %v327_v36 }
 0x1b4   :  { %445 = vst.msk [vmem:[%s720_s6 + $0x8] sm:$0xff] %vm443_vm3, %v430_v35  ;;  %v449_v39 = vsel %vm443_vm3, %v430_v35, 0.0  ;;  %v462_v40 = vmul.f32 %v430_v35, %v430_v35 }
 0x1b5   :  { %444 = vst.msk [vmem:[%s720_s6] sm:$0xff] %vm443_vm3, %v425_v38  ;;  %v448_v41 = vsel %vm443_vm3, %v425_v38, 0.0  ;;  %v461_v42 = vmul.f32 %v425_v38, %v425_v38  ;;  %v555_v43 = vpop.f32.mrb[6].mxu1  ;;  %v565_v44 = vpop.f32.mrb[6].mxu0 }
 0x1b6   :  { %v466_v45 = vsel %vm443_vm3, %v462_v40, 0.0  ;;  %v450_v46 = vadd.f32 %v449_v39, %v448_v41  ;;  %v440_v47 = vadd.f32 %v565_v44, %v555_v43  ;;  %v337_v48 = vpop.f32.mrb[7].mxu1  ;;  %v434_v49 = vpop.f32.mrb[7].mxu0 }
 0x1b7   :  { %v465_v50 = vsel %vm443_vm3, %v461_v42, 0.0  ;;  %v435_v51 = vadd.f32 %v434_v49, %v337_v48 }
 0x1b8   :  { %v467_v52 = vadd.f32 %v466_v45, %v465_v50  ;;  %447 = vst.msk [vmem:[%s720_s6 + $0x18] sm:$0xff] %vm443_vm3, %v440_v47  ;;  %v464_v53 = vmul.f32 %v440_v47, %v440_v47  ;;  %v453_v57 = vsel %vm443_vm3, %v440_v47, 0.0 }
 0x1b9   :  { %446 = vst.msk [vmem:[%s720_s6 + $0x10] sm:$0xff] %vm443_vm3, %v435_v51  ;;  %v451_v54 = vsel %vm443_vm3, %v435_v51, 0.0  ;;  %v463_v55 = vmul.f32 %v435_v51, %v435_v51 }
 0x1ba   :  { %v452_v56 = vadd.f32 %v451_v54, %v450_v46  ;;  %v470_v61 = vsel %vm443_vm3, %v464_v53, 0.0 }
 0x1bb   :  { %v468_v58 = vsel %vm443_vm3, %v463_v55, 0.0 }
 0x1bc   :  { %v454_v59 = vadd.f32 %v453_v57, %v452_v56  ;;  %v469_v60 = vadd.f32 %v468_v58, %v467_v52 }
 0x1be   :  { %v455_v62 = vrot.slane %v454_v59, 4  ;;  %v471_v63 = vadd.f32 %v470_v61, %v469_v60 }
 0x1c0   :  { %v456_v0 = vadd.f32 %v455_v62, %v454_v59  ;;  %v472_v1 = vrot.slane %v471_v63, 4 }
 0x1c2   :  { %v457_v2 = vrot.slane %v456_v0, 2  ;;  %v473_v3 = vadd.f32 %v472_v1, %v471_v63 }
 0x1c4   :  { %v458_v4 = vadd.f32 %v457_v2, %v456_v0  ;;  %v474_v5 = vrot.slane %v473_v3, 2 }
 0x1c6   :  { %v459_v6 = vrot.slane %v458_v4, 1  ;;  %v475_v7 = vadd.f32 %v474_v5, %v473_v3 }
 0x1c8   :  { %v476_v8 = vrot.slane %v475_v7, 1  ;;  %v460_v9 = vadd.f32 %v459_v6, %v458_v4 }
 0x1ca   :  { %v477_v10 = vadd.f32 %v476_v8, %v475_v7 }
 0x1cc   :  { %v480_v12 = vsel %vm479_vm4, %v460_v9, %v477_v10 }
 0x1cd   :  { %v481_v13 = vadd.f32 %v480_v12, %v478_v11 }
 0x1cf   :  { %483 = vst.msk [vmem:[%s719_s7] sm:$0x3] %vm29_vm2, %v481_v13 }

// kernel: _lambda_.8
= control target key start
LH: loop header
LB: loop body
LE: loop exit
PB: predicated region body
PF: predicated region fallthrough
CT: control target
= control target key end

     0   :  { %vm44_vm0 = vcmask 261120   ;;  %s105_s0 = inlined_call_operand.vmem [shape: f32[32,32], index: 0, kind: input, shape index: {}]   ;;  %s106_s1 = inlined_call_operand.vmem [shape: f32[1,32], index: 1, kind: input, shape index: {}]   ;;  %s107_s2 = inlined_call_operand.vmem [shape: f32[1,32], index: 2, kind: input, shape index: {}]   ;;  %s108_s3 = inlined_call_operand.vmem [shape: f32[32,32], index: 3, kind: output, shape index: {}]  }
   0x1   :  { %v14_v0 = vld [vmem:[%s105_s0] sm:$0xff]  ;;  %v15_v4 = vld [vmem:[%s105_s0 + $0x8] sm:$0xff]  ;;  %v16_v5 = vld [vmem:[%s105_s0 + $0x10] sm:$0xff] }
   0x2   :  { %v53_v1 = vld [vmem:[%s106_s1] ss:$0 sm:$0xff]  ;;  %v17_v6 = vld [vmem:[%s105_s0 + $0x18] sm:$0xff] }
   0x3   :  { %v54_v2 = vld [vmem:[%s107_s2] ss:$0 sm:$0xff]  ;;  %v25_v3 = vmul.f32 %v53_v1, %v14_v0  ;;  %v26_v7 = vmul.f32 %v53_v1, %v15_v4  ;;  %v27_v8 = vmul.f32 %v53_v1, %v16_v5  ;;  %v28_v9 = vmul.f32 %v53_v1, %v17_v6 }
   0x5   :  { %v36_v10 = vadd.f32 %v54_v2, %v25_v3  ;;  %v37_v11 = vadd.f32 %v54_v2, %v26_v7  ;;  %v38_v12 = vadd.f32 %v54_v2, %v27_v8  ;;  %v39_v13 = vadd.f32 %v54_v2, %v28_v9 }
   0x7   :  { %v40_v14 = vmax.f32 %v36_v10, 0.0  ;;  %v41_v15 = vmax.f32 %v37_v11, 0.0  ;;  %v42_v16 = vmax.f32 %v38_v12, 0.0  ;;  %v43_v17 = vmax.f32 %v39_v13, 0.0 }
   0x9   :  { %45 = vst.msk [vmem:[%s108_s3] sm:$0xff] %vm44_vm0, %v40_v14  ;;  %46 = vst.msk [vmem:[%s108_s3 + $0x8] sm:$0xff] %vm44_vm0, %v41_v15 }
   0xa   :  { %47 = vst.msk [vmem:[%s108_s3 + $0x10] sm:$0xff] %vm44_vm0, %v42_v16  ;;  %48 = vst.msk [vmem:[%s108_s3 + $0x18] sm:$0xff] %vm44_vm0, %v43_v17 }

// kernel: _lambda_.9
= control target key start
LH: loop header
LB: loop body
LE: loop exit
PB: predicated region body
PF: predicated region fallthrough
CT: control target
= control target key end

     0   :  { %13 = vsyncpa [#allocation3], 0  ;;  %vm29_vm0 = vcmask 130048   ;;  %s679_s0 = inlined_call_operand.vmem [shape: f32[32,16], index: 0, kind: input, shape index: {}]   ;;  %s680_s1 = inlined_call_operand.vmem [shape: f32[32,16], index: 1, kind: input, shape index: {}]   ;;  %s681_s2 = inlined_call_operand.vmem [shape: f32[16,5], index: 2, kind: input, shape index: {}]   ;;  %s682_s3 = inlined_call_operand.vmem [shape: f32[16,5], index: 3, kind: input, shape index: {}]   ;;  %s683_s4 = inlined_call_operand.vmem [shape: f32[32,5], index: 4, kind: output, shape index: {0}]   ;;  %s684_s5 = inlined_call_operand.vmem [shape: f32[32,5], index: 5, kind: output, shape index: {1}]   ;;  %s685_s6 = inlined_call_operand.hbm [shape: f32[32,5], index: 6, kind: output, shape index: {2}]   ;;  %s686_s7 = inlined_call_operand.hbm [shape: f32[32,5], index: 7, kind: output, shape index: {3}]  }
   0x1   :  { %v27_v0 = vld [vmem:[%s681_s2] sm:$0xff]  ;;  %v28_v1 = vld [vmem:[%s681_s2 + $0x8] sm:$0xff] }
   0x2   :  { %v184_v2 = vld [vmem:[%s682_s3] sm:$0xff]  ;;  %v415_v3 = vpack.c.bf16 %v28_v1, %v27_v0  ;;  %v185_v4 = vld [vmem:[%s682_s3 + $0x8] sm:$0xff] }
   0x3   :  { %v23_v5 = vld [vmem:[%s679_s0] sm:$0xff]  ;;  %v419_v7 = vpack.c.bf16 %v185_v4, %v184_v2  ;;  %v24_v8 = vld [vmem:[%s679_s0 + $0x8] sm:$0xff] }
   0x4   :  { %v180_v6 = vld [vmem:[%s680_s1] sm:$0xff]  ;;  %399 = vmatprep.mubr.msk.f32.mxu0 %vm29_vm0, %v23_v5  ;;  %416 = vmatprep.subr.bf16.mxu0 %v415_v3 }
   0x5   :  { %409 = vmatprep.mubr.msk.f32.mxu1 %vm29_vm0, %v180_v6  ;;  %420 = vmatprep.subr.bf16.mxu1 %v419_v7 }
   0x6   :  { %418 = vmatpush3.bf16.msra.mxu0 %v415_v3 }
   0x7   :  { %14 = vsyncpa [#allocation5], 0  ;;  %422 = vmatpush3.bf16.msra.mxu1 %v419_v7  ;;  %v181_v9 = vld [vmem:[%s680_s1 + $0x8] sm:$0xff]  ;;  %v25_v10 = vld [vmem:[%s679_s0 + $0x10] sm:$0xff]  ;;  %vm127_vm1 = vcmask 39936   ;;  %s508_s13 = smov [#allocation4]  }
   0x8   :  { %v182_v11 = vld [vmem:[%s680_s1 + $0x10] sm:$0xff]  ;;  %v26_v12 = vld [vmem:[%s679_s0 + $0x18] sm:$0xff]  ;;  %s356_s3 = sshll.u32 %s508_s13, 4  ;;  %s357_s3 = int_to_ptr.vmem [resolvable:$true] %s356_s3 }
   0x9   :  { %400 = vmatmul.mubr.msk.f32.vlgmr.msra.gmra.mrb[0].mxu0 %vm29_vm0, %v24_v8  ;;  %v183_v13 = vld [vmem:[%s680_s1 + $0x18] sm:$0xff] }
   0xa   :  { %410 = vmatmul.mubr.msk.f32.vlgmr.msra.gmra.mrb[0].mxu1 %vm29_vm0, %v181_v9  ;;  %402 = vmatprep.mubr.msk.f32.mxu0 %vm29_vm0, %v25_v10 }
   0xb   :  { %412 = vmatprep.mubr.msk.f32.mxu1 %vm29_vm0, %v182_v11 }
   0xd   :  { %403 = vmatmul.mubr.msk.f32.gmra.mrb[2].mxu0 %vm29_vm0, %v26_v12 }
   0xe   :  { %413 = vmatmul.mubr.msk.f32.gmra.mrb[2].mxu1 %vm29_vm0, %v183_v13 }
  0xdc   :  { %v401_v14 = vpop.f32.mrb[0].mxu0 }
  0xdd   :  { %129 = vst.msk [vmem:[%s683_s4 + $0x8] sm:$0xff] %vm127_vm1, %v401_v14  ;;  %v411_v15 = vpop.f32.mrb[0].mxu1  ;;  %v108_v16 = vpop.f32.mrb[1].mxu0  ;;  %v135_v17 = vsel %vm127_vm1, %v401_v14, -inf }
  0xde   :  { %284 = vst.msk [vmem:[%s684_s5 + $0x8] sm:$0xff] %vm127_vm1, %v411_v15  ;;  %128 = vst.msk [vmem:[%s683_s4] sm:$0xff] %vm127_vm1, %v108_v16  ;;  %v290_v18 = vsel %vm127_vm1, %v411_v15, -inf  ;;  %136 = vmax.xlane.f32.xlu0 %v135_v17  ;;  %v264_v19 = vpop.f32.mrb[1].mxu1  ;;  %v132_v21 = vsel %vm127_vm1, %v108_v16, -inf }
  0xdf   :  { %291 = vmax.xlane.f32.xlu1 %v290_v18  ;;  %283 = vst.msk [vmem:[%s684_s5] sm:$0xff] %vm127_vm1, %v264_v19  ;;  %v287_v27 = vsel %vm127_vm1, %v264_v19, -inf }
  0xe0   :  { %v404_v20 = vpop.f32.mrb[2].mxu0 }
  0xe1   :  { %131 = vst.msk [vmem:[%s683_s4 + $0x18] sm:$0xff] %vm127_vm1, %v404_v20  ;;  %v141_v22 = vsel %vm127_vm1, %v404_v20, -inf  ;;  %v118_v23 = vpop.f32.mrb[3].mxu0  ;;  %v414_v24 = vpop.f32.mrb[2].mxu1 }
  0xe2   :  { %133 = vmax.xlane.f32.xlu0 %v132_v21  ;;  %130 = vst.msk [vmem:[%s683_s4 + $0x10] sm:$0xff] %vm127_vm1, %v118_v23  ;;  %286 = vst.msk [vmem:[%s684_s5 + $0x18] sm:$0xff] %vm127_vm1, %v414_v24  ;;  %v274_v25 = vpop.f32.mrb[3].mxu1  ;;  %v138_v26 = vsel %vm127_vm1, %v118_v23, -inf  ;;  %v296_v29 = vsel %vm127_vm1, %v414_v24, -inf  ;;  %s507_s4 = smov [#allocation2]  }
  0xe3   :  { %142 = vmax.xlane.f32.xlu1 %v141_v22  ;;  %285 = vst.msk [vmem:[%s684_s5 + $0x10] sm:$0xff] %vm127_vm1, %v274_v25  ;;  %v293_v28 = vsel %vm127_vm1, %v274_v25, -inf  ;;  %s344_s5 = sshll.u32 %s507_s4, 4  ;;  %s345_s5 = int_to_ptr.vmem [resolvable:$true] %s344_s5 }
  0xe4   :  { %s459_s14 = scalar_lea.vmem %s345_s5, 512  ;;  %p464_p1 = scmp.lt.s32.totalorder %s345_s5, %s345_s5 }
  0xe5   :  { %p460_p0 = scmp.ne.s32.totalorder %s345_s5, %s459_s14  ;;  %p465_p2 = scmp.lt.s32.totalorder %s459_s14, %s459_s14 }
  0xe6   :  { %288 = vmax.xlane.f32.xlu0 %v287_v27 }
  0xe7   :  { %139 = vmax.xlane.f32.xlu1 %v138_v26  ;;  %p466_p3 = por %p465_p2, %p464_p1 }
  0xe9   :  { %p467_p4 = pnand %p466_p3, %p460_p0 }
  0xea   :  { %294 = vmax.xlane.f32.xlu0 %v293_v28 }
  0xeb   :  { %297 = vmax.xlane.f32.xlu1 %v296_v29 }
 0x16b   :  { %v137_v30 = vpop.xlane.xlu0 %136 }
 0x16c   :  { %v292_v31 = vpop.xlane.xlu1 %291  ;;  %v145_v32 = vsub.f32 %v401_v14, %v137_v30 }
 0x16d   :  { %v300_v33 = vsub.f32 %v411_v15, %v292_v31 }
 0x16e   :  { %v150_v34 = vmul.f32 1.442695, %v145_v32 }
 0x16f   :  { %v305_v35 = vmul.f32 1.442695, %v300_v33  ;;  %v134_v36 = vpop.xlane.xlu0 %133 }
 0x170   :  { %427 = vpow2.f32 %v150_v34  ;;  %v144_v37 = vsub.f32 %v108_v16, %v134_v36  ;;  %v143_v38 = vpop.xlane.xlu1 %142 }
 0x171   :  { %v147_v39 = vsub.f32 %v404_v20, %v143_v38  ;;  %429 = vpow2.f32 %v305_v35 }
 0x172   :  { %v148_v40 = vmul.f32 1.442695, %v144_v37 }
 0x173   :  { %v154_v41 = vmul.f32 1.442695, %v147_v39  ;;  %v289_v42 = vpop.xlane.xlu0 %288 }
 0x174   :  { %431 = vpow2.f32 %v148_v40  ;;  %v299_v43 = vsub.f32 %v264_v19, %v289_v42  ;;  %v140_v44 = vpop.xlane.xlu1 %139 }
 0x175   :  { %v146_v45 = vsub.f32 %v118_v23, %v140_v44  ;;  %433 = vpow2.f32 %v154_v41 }
 0x176   :  { %v303_v46 = vmul.f32 1.442695, %v299_v43 }
 0x177   :  { %v152_v47 = vmul.f32 1.442695, %v146_v45  ;;  %v295_v48 = vpop.xlane.xlu0 %294 }
 0x178   :  { %435 = vpow2.f32 %v303_v46  ;;  %v301_v49 = vsub.f32 %v274_v25, %v295_v48  ;;  %v298_v50 = vpop.xlane.xlu1 %297 }
 0x179   :  { %v302_v51 = vsub.f32 %v414_v24, %v298_v50  ;;  %437 = vpow2.f32 %v152_v47 }
 0x17a   :  { %v428_v52 = vpop.eup %427  ;;  %v307_v53 = vmul.f32 1.442695, %v301_v49 }
 0x17b   :  { %v309_v54 = vmul.f32 1.442695, %v302_v51  ;;  %v159_v55 = vsel %vm127_vm1, %v428_v52, 0.0  ;;  %v430_v56 = vpop.eup %429 }
 0x17c   :  { %160 = vadd.xlane.f32.xlu1 %v159_v55  ;;  %v314_v59 = vsel %vm127_vm1, %v430_v56, 0.0 }
 0x17d   :  { %439 = vpow2.f32 %v309_v54 }
 0x17e   :  { %v432_v57 = vpop.eup %431  ;;  %441 = vpow2.f32 %v307_v53 }
 0x17f   :  { %v156_v58 = vsel %vm127_vm1, %v432_v57, 0.0  ;;  %v434_v60 = vpop.eup %433 }
 0x180   :  { %157 = vadd.xlane.f32.xlu0 %v156_v58  ;;  %315 = vadd.xlane.f32.xlu1 %v314_v59  ;;  %v165_v63 = vsel %vm127_vm1, %v434_v60, 0.0 }
 0x182   :  { %v436_v61 = vpop.eup %435 }
 0x183   :  { %v311_v62 = vsel %vm127_vm1, %v436_v61, 0.0  ;;  %v438_v0 = vpop.eup %437 }
 0x184   :  { %312 = vadd.xlane.f32.xlu0 %v311_v62  ;;  %166 = vadd.xlane.f32.xlu1 %v165_v63  ;;  %v162_v2 = vsel %vm127_vm1, %v438_v0, 0.0 }
 0x187   :  { %v440_v1 = vpop.eup %439 }
 0x188   :  { %v641_v3 = vpop.eup %441  ;;  %163 = vadd.xlane.f32.xlu0 %v162_v2  ;;  %v320_v4 = vsel %vm127_vm1, %v440_v1, 0.0 }
 0x189   :  { %321 = vadd.xlane.f32.xlu1 %v320_v4  ;;  %v317_v5 = vsel %vm127_vm1, %v641_v3, 0.0 }
 0x18c   :  { %318 = vadd.xlane.f32.xlu0 %v317_v5 }
 0x209   :  { %v161_v6 = vpop.xlane.xlu1 %160 }
 0x20a   :  { %443 = vrcp.f32 %v161_v6 }
 0x20d   :  { %v158_v7 = vpop.xlane.xlu0 %157  ;;  %v316_v8 = vpop.xlane.xlu1 %315 }
 0x20e   :  { %445 = vrcp.f32 %v158_v7 }
 0x20f   :  { %447 = vrcp.f32 %v316_v8 }
 0x211   :  { %v313_v9 = vpop.xlane.xlu0 %312  ;;  %v167_v10 = vpop.xlane.xlu1 %166 }
 0x212   :  { %449 = vrcp.f32 %v313_v9 }
 0x213   :  { %451 = vrcp.f32 %v167_v10 }
 0x214   :  { %v444_v11 = vpop.eup %443 }
 0x215   :  { %v171_v12 = vmul.f32 %v444_v11, %v428_v52  ;;  %v164_v13 = vpop.xlane.xlu0 %163 }
 0x216   :  { %453 = vrcp.f32 %v164_v13  ;;  %v322_v14 = vpop.xlane.xlu1 %321 }
 0x217   :  { %177 = vst.msk [vmem:[#allocation2 + $0x8] sm:$0xff] %vm127_vm1, %v171_v12  ;;  %455 = vrcp.f32 %v322_v14 }
 0x218   :  { %v446_v15 = vpop.eup %445 }
 0x219   :  { %v448_v16 = vpop.eup %447  ;;  %v169_v17 = vmul.f32 %v446_v15, %v432_v57  ;;  %v319_v18 = vpop.xlane.xlu0 %318 }
 0x21a   :  { %v326_v19 = vmul.f32 %v448_v16, %v430_v56  ;;  %457 = vrcp.f32 %v319_v18 }
 0x21b   :  { %176 = vst.msk [vmem:[#allocation2] sm:$0xff] %vm127_vm1, %v169_v17 }
 0x21c   :  { %v450_v20 = vpop.eup %449  ;;  %332 = vst.msk [vmem:[#allocation4 + $0x8] sm:$0xff] %vm127_vm1, %v326_v19 }
 0x21d   :  { %v452_v21 = vpop.eup %451  ;;  %v324_v22 = vmul.f32 %v450_v20, %v436_v61 }
 0x21e   :  { %v175_v23 = vmul.f32 %v452_v21, %v434_v60 }
 0x21f   :  { %331 = vst.msk [vmem:[#allocation4] sm:$0xff] %vm127_vm1, %v324_v22 }
 0x220   :  { %v454_v24 = vpop.eup %453  ;;  %179 = vst.msk [vmem:[#allocation2 + $0x18] sm:$0xff] %vm127_vm1, %v175_v23 }
 0x221   :  { %v456_v25 = vpop.eup %455  ;;  %v173_v26 = vmul.f32 %v454_v24, %v438_v0 }
 0x222   :  { %v330_v27 = vmul.f32 %v456_v25, %v440_v1 }
 0x223   :  { %178 = vst.msk [vmem:[#allocation2 + $0x10] sm:$0xff] %vm127_vm1, %v173_v26 }
 0x224   :  { %v458_v28 = vpop.eup %457  ;;  %334 = vst.msk [vmem:[#allocation4 + $0x18] sm:$0xff] %vm127_vm1, %v330_v27 }
 0x225   :  { %470 = shalt.err (!%p467_p4)
}
 0x226   :  { %s471_s17 = scalar_lea.hbm %s685_s6, 512 }
 0x227   :  { %p472_p5 = scmp.ne.s32.totalorder %s685_s6, %s471_s17  ;;  %p475_p6 = scmp.lt.u32.totalorder %s471_s17, %s685_s6 }
 0x229   :  { %p477_p7 = pnand %p475_p6, %p472_p5 }
 0x22b   :  { %480 = shalt.err (!%p477_p7)
}
 0x22c   :  { %s509_s22 = smov 128   ;;  %s510_s23 = smov 8   ;;  %v328_v29 = vmul.f32 %v458_v28, %v641_v3 }
 0x22d   :  { %350 = dma.vmem_to_hbm [thread:$0]  %s345_s5, 512, %s685_s6, [#allocation3], %s509_s22, %s509_s22, %s510_s23  }
 0x22e   :  { %333 = vst.msk [vmem:[#allocation4 + $0x10] sm:$0xff] %vm127_vm1, %v328_v29  ;;  %s481_s25 = scalar_lea.vmem %s357_s3, 512  ;;  %p486_p9 = scmp.lt.s32.totalorder %s357_s3, %s357_s3 }
 0x22f   :  { %p482_p8 = scmp.ne.s32.totalorder %s357_s3, %s481_s25  ;;  %p487_p10 = scmp.lt.s32.totalorder %s481_s25, %s481_s25 }
 0x231   :  { %p488_p11 = por %p487_p10, %p486_p9 }
 0x233   :  { %p489_p12 = pnand %p488_p11, %p482_p8 }
 0x235   :  { %492 = shalt.err (!%p489_p12)
}
 0x236   :  { %s493_s27 = scalar_lea.hbm %s686_s7, 512 }
 0x237   :  { %p494_p13 = scmp.ne.s32.totalorder %s686_s7, %s493_s27  ;;  %p497_p0 = scmp.lt.u32.totalorder %s493_s27, %s686_s7 }
 0x239   :  { %p499_p1 = pnand %p497_p0, %p494_p13 }
 0x23b   :  { %502 = shalt.err (!%p499_p1)
}
 0x23c   :  { %362 = dma.vmem_to_hbm [thread:$0]  %s357_s3, 512, %s686_s7, [#allocation5], %s509_s22, %s509_s22, %s510_s23  }
 0x23d   :  { %503 = dma.done.wait [#allocation3], 512  }
 0x23e   :  { %504 = vsyncadd [#allocation3], 4294966784 }
 0x23f   :  { %505 = dma.done.wait [#allocation5], 512  }
 0x240   :  { %506 = vsyncadd [#allocation5], 4294966784 }
 0x241   :  { %373 = vsyncpa [#allocation3], 1 }
 0x242   :  { %374 = vsyncpa [#allocation5], 1 }

</bundles_post_ra>
